<compile_context>
chip_gen: v7x
topology: tpu7x:2x2x1
jax: 0.10.0
libtpu: 0.0.40
codegen_flags: <defaults>
</compile_context>

<pallas_src>
import functools

import jax
import jax.numpy as jnp
from jax import lax
from jax.experimental import pallas as pl
from jax.experimental.pallas import tpu as pltpu


def _seg_head_kernel(xc_ref, xt_ref, xb_ref, w3_ref, bnb_ref, w1_ref, b1_ref,
                     o_ref, xpad_ref, p_ref, *, TH, W, C_in, C_mid, C_out_p, mm_dtype):
    """One grid step = one (batch, row-tile) pair.

    xc_ref  : (1, TH, W, C_in)   un-padded center rows of the tile (NHWC)
    xt_ref  : (1, 1, W, C_in)    row above the tile (clamped; ignored when i == 0)
    xb_ref  : (1, 1, W, C_in)    row below the tile (clamped; ignored when i == last)
    w3_ref  : (9*C_in, C_mid)    3x3 conv weights, im2col row order (dy, dx, c), BN scale folded
    bnb_ref : (1, C_mid)         folded eval-mode BatchNorm bias (f32)
    w1_ref  : (C_out_p, C_mid)   1x1 conv weight, classes zero-padded to a multiple of 8
    b1_ref  : (C_out_p, 1)       1x1 conv bias, zero-padded (f32)
    o_ref   : (1, C_out_p, TH*W) lane-dense, NCHW-ready output tile
    xpad_ref: VMEM (TH+2, W+2, C_in) zero-padded halo tile (persists across steps)
    p_ref   : VMEM (TH, W, 9*C_in)   im2col patch buffer
    """
    i = pl.program_id(1)
    n_tiles = pl.num_programs(1)

    # ---- halo assembly (conditional zeroing only; scratch persists across grid steps) ----
    # Pad columns are never written with data, so (re)zero them every step (cheap: 2 columns).
    zcol = jnp.zeros((TH + 2, 1, C_in), xpad_ref.dtype)
    xpad_ref[:, 0:1, :] = zcol
    xpad_ref[:, W + 1:W + 2, :] = zcol

    # Interior rows are fully overwritten each step.
    xpad_ref[1:TH + 1, 1:W + 1, :] = xc_ref[0]

    # Top halo row: real row above the tile, or zero at the top image border.
    @pl.when(i > 0)
    def _():
        xpad_ref[0:1, 1:W + 1, :] = xt_ref[0]

    @pl.when(i == 0)
    def _():
        xpad_ref[0:1, 1:W + 1, :] = jnp.zeros((1, W, C_in), xpad_ref.dtype)

    # Bottom halo row: real row below the tile, or zero at the bottom image border.
    @pl.when(i < n_tiles - 1)
    def _():
        xpad_ref[TH + 1:TH + 2, 1:W + 1, :] = xb_ref[0]

    @pl.when(i == n_tiles - 1)
    def _():
        xpad_ref[TH + 1:TH + 2, 1:W + 1, :] = jnp.zeros((1, W, C_in), xpad_ref.dtype)

    # ---- im2col: one (TH, W, 9*C_in) patch buffer in VMEM (columns ordered (dy, dx, c)) ----
    # TODO(synk): for tiny C_in these are masked sub-vreg stores; a roll/accumulate form would
    # avoid them, at the cost of 9 small-K matmuls.
    for dy in range(3):
        for dx in range(3):
            t = dy * 3 + dx
            p_ref[:, :, t * C_in:(t + 1) * C_in] = xpad_ref[dy:dy + TH, dx:dx + W, :]
    patches = p_ref[...].reshape(TH * W, 9 * C_in)

    # ---- 3x3 conv as a single MXU matmul (K = 9*C_in), f32 accumulation ----
    acc = jnp.dot(patches, w3_ref[...], preferred_element_type=jnp.float32)

    # ---- folded eval-mode BatchNorm bias + ReLU (scale already folded into w3) ----
    y = jnp.maximum(acc + bnb_ref[...], 0.0)

    # ---- 1x1 conv (+bias), transposed: (C_out_p, TH*W) so lanes are spatial (dense stores) ----
    out = lax.dot_general(w1_ref[...], y.astype(mm_dtype),
                          dimension_numbers=(((1,), (1,)), ((), ())),
                          preferred_element_type=jnp.float32)
    out = out + b1_ref[...]
    o_ref[...] = out.reshape(1, C_out_p, TH * W).astype(o_ref.dtype)


def _tile_vmem_bytes(th, W, C_in, C_mid, C_out_p, mm_bytes, out_bytes):
    """Rough per-step VMEM footprint (scratch + double-buffered pipelined blocks)."""
    xpad = (th + 2) * (W + 2) * C_in * mm_bytes
    patch = th * W * 9 * C_in * mm_bytes
    xc = 2 * th * W * C_in * mm_bytes                 # double-buffered center rows
    halo = 2 * 2 * W * C_in * mm_bytes                # double-buffered halo rows
    out = 2 * C_out_p * th * W * out_bytes            # double-buffered output tile
    wts = 2 * (9 * C_in * C_mid + C_mid * C_out_p) * mm_bytes
    return xpad + patch + xc + halo + out + wts


def _pick_tile_h(H, W, requested, C_in, C_mid, C_out_p, mm_bytes, out_bytes,
                 budget_bytes=40 * 1024 * 1024):
    """Largest divisor of H <= requested with TH*W % 128 == 0 that fits the VMEM budget."""
    aligned = [th for th in range(1, H + 1)
               if H % th == 0 and (th * W) % 128 == 0]
    if not aligned:
        # No row tiling keeps the lane-dense output block 128-aligned; fall back to a single
        # whole-image tile (block dims == full array dims are always legal).
        return H
    fits = [th for th in aligned
            if _tile_vmem_bytes(th, W, C_in, C_mid, C_out_p, mm_bytes, out_bytes)
            <= budget_bytes]
    pool = fits if fits else [min(aligned)]
    capped = [th for th in pool if th <= requested]
    return max(capped) if capped else min(pool)


def seg_head_forward(x_nchw, w3, bn_gamma, bn_beta, bn_mean, bn_var, w1, b1,
                     eps=1e-5, tile_h=16, matmul_dtype=jnp.bfloat16):
    """Forward pass matching SegmentationHead.forward (eval-mode BN).

    x_nchw : (N, C_in, H, W)
    w3     : (C_mid, C_in, 3, 3)   PyTorch OIHW
    w1     : (n_classes, C_mid, 1, 1)
    returns: (N, n_classes, H, W)
    """
    N, C_in, H, W = x_nchw.shape
    C_mid = w3.shape[0]
    n_classes = w1.shape[0]
    C_out_p = ((n_classes + 7) // 8) * 8             # classes padded to sublane multiple only
    mm = matmul_dtype
    mm_bytes = jnp.dtype(mm).itemsize
    out_dtype = x_nchw.dtype
    out_bytes = jnp.dtype(out_dtype).itemsize

    TH = _pick_tile_h(H, W, tile_h, C_in, C_mid, C_out_p, mm_bytes, out_bytes)
    n_row_tiles = H // TH
    est = _tile_vmem_bytes(TH, W, C_in, C_mid, C_out_p, mm_bytes, out_bytes)
    vmem_limit = int(min(max(32 << 20, 1.5 * est + (8 << 20)), 56 << 20))

    # NCHW -> NHWC (interface transpose), fused with the cast to the matmul dtype.
    # NOTE: no jnp.pad here — the conv halo is assembled inside the kernel.
    x = jnp.transpose(x_nchw, (0, 2, 3, 1)).astype(mm)  # (N, H, W, C_in)

    # Fold eval-mode BatchNorm: scale goes into the 3x3 weights, bias stays for the epilogue.
    inv = 1.0 / jnp.sqrt(bn_var + eps)
    scale = bn_gamma * inv                                       # (C_mid,)
    bnb = (bn_beta - bn_mean * scale).reshape(1, C_mid).astype(jnp.float32)

    # 3x3 weights: OIHW -> (9*C_in, C_mid), row order (dy, dx, c), BN scale folded in (f32).
    w3_k = (jnp.transpose(w3, (2, 3, 1, 0)).reshape(9 * C_in, C_mid)
            * scale[None, :]).astype(mm)

    # 1x1 conv weights/bias in (class, C_mid) layout, classes zero-padded to C_out_p.
    w1_ck = jnp.zeros((C_out_p, C_mid), mm).at[:n_classes, :].set(
        w1.reshape(n_classes, C_mid).astype(mm))
    b1_k = jnp.zeros((C_out_p, 1), jnp.float32).at[:n_classes, 0].set(
        b1.astype(jnp.float32))

    kernel = functools.partial(_seg_head_kernel, TH=TH, W=W, C_in=C_in,
                               C_mid=C_mid, C_out_p=C_out_p, mm_dtype=mm)

    out_flat = pl.pallas_call(
        kernel,
        out_shape=jax.ShapeDtypeStruct((N, C_out_p, H * W), out_dtype),
        grid_spec=pltpu.PrefetchScalarGridSpec(
            num_scalar_prefetch=0,
            grid=(N, n_row_tiles),
            in_specs=[
                # center rows of the tile
                pl.BlockSpec((1, TH, W, C_in), lambda n, i: (n, i, 0, 0)),
                # halo row above (clamped into range; masked out in-kernel when i == 0)
                pl.BlockSpec((1, 1, W, C_in),
                             lambda n, i: (n, jnp.maximum(i * TH - 1, 0), 0, 0)),
                # halo row below (clamped; masked out in-kernel when i == last)
                pl.BlockSpec((1, 1, W, C_in),
                             lambda n, i: (n, jnp.minimum((i + 1) * TH, H - 1), 0, 0)),
                pl.BlockSpec((9 * C_in, C_mid), lambda n, i: (0, 0)),
                pl.BlockSpec((1, C_mid), lambda n, i: (0, 0)),
                pl.BlockSpec((C_out_p, C_mid), lambda n, i: (0, 0)),
                pl.BlockSpec((C_out_p, 1), lambda n, i: (0, 0)),
            ],
            out_specs=pl.BlockSpec((1, C_out_p, TH * W), lambda n, i: (n, 0, i)),
            scratch_shapes=[
                pltpu.VMEM((TH + 2, W + 2, C_in), mm),   # zero-padded halo tile
                pltpu.VMEM((TH, W, 9 * C_in), mm),       # im2col patch buffer
            ],
        ),
        compiler_params=pltpu.CompilerParams(
            dimension_semantics=("parallel", "parallel"),
            vmem_limit_bytes=vmem_limit),
    )(x, x, x, w3_k, bnb, w1_ck, b1_k)

    # Output is already channel-major (NCHW-ready); drop class padding if any (no transpose).
    if C_out_p != n_classes:
        out_flat = out_flat[:, :n_classes, :]
    return out_flat.reshape(N, n_classes, H, W)


def _reference(x_nchw, w3, bn_gamma, bn_beta, bn_mean, bn_var, w1, b1, eps=1e-5):
    """Plain-JAX reference (NCHW conv, eval-mode BN, ReLU, 1x1 conv)."""
    y = lax.conv_general_dilated(x_nchw, w3, window_strides=(1, 1), padding=((1, 1), (1, 1)),
                                 dimension_numbers=("NCHW", "OIHW", "NCHW"))
    inv = 1.0 / jnp.sqrt(bn_var + eps)
    y = (y - bn_mean[None, :, None, None]) * (bn_gamma * inv)[None, :, None, None] \
        + bn_beta[None, :, None, None]
    y = jnp.maximum(y, 0.0)
    z = lax.conv_general_dilated(y, w1, window_strides=(1, 1), padding=((0, 0), (0, 0)),
                                 dimension_numbers=("NCHW", "OIHW", "NCHW"))
    return z + b1[None, :, None, None]


if __name__ == "__main__":
    key = jax.random.PRNGKey(0)
    k_x, k_w3, k_g, k_b, k_m, k_v, k_w1, k_b1 = jax.random.split(key, 8)

    N, C_in, H, W = 2, 4, 16, 16
    C_mid, n_classes = 32, 8

    x = jax.random.normal(k_x, (N, C_in, H, W), jnp.float32)
    w3 = jax.random.normal(k_w3, (C_mid, C_in, 3, 3), jnp.float32) * 0.1
    bn_gamma = 1.0 + 0.1 * jax.random.normal(k_g, (C_mid,), jnp.float32)
    bn_beta = 0.1 * jax.random.normal(k_b, (C_mid,), jnp.float32)
    bn_mean = 0.1 * jax.random.normal(k_m, (C_mid,), jnp.float32)
    bn_var = jnp.abs(1.0 + 0.1 * jax.random.normal(k_v, (C_mid,), jnp.float32))
    w1 = jax.random.normal(k_w1, (n_classes, C_mid, 1, 1), jnp.float32) * 0.1
    b1 = 0.1 * jax.random.normal(k_b1, (n_classes,), jnp.float32)

    ref = jax.block_until_ready(_reference(x, w3, bn_gamma, bn_beta, bn_mean, bn_var, w1, b1))

    # f32 path with tile_h=8 so the cross-tile halo logic (and border zeroing) is exercised.
    out_f32 = jax.block_until_ready(
        seg_head_forward(x, w3, bn_gamma, bn_beta, bn_mean, bn_var, w1, b1,
                         tile_h=8, matmul_dtype=jnp.float32))
    assert out_f32.shape == (N, n_classes, H, W)
    assert jnp.allclose(out_f32, ref, atol=1e-3, rtol=1e-3), float(jnp.max(jnp.abs(out_f32 - ref)))

    # Default fast path (bf16 matmul inputs, f32 accumulation, tile_h=16) — looser tolerance.
    out_bf16 = jax.block_until_ready(
        seg_head_forward(x, w3, bn_gamma, bn_beta, bn_mean, bn_var, w1, b1))
    assert out_bf16.shape == (N, n_classes, H, W)
    assert jnp.allclose(out_bf16, ref, atol=5e-2, rtol=5e-2), float(jnp.max(jnp.abs(out_bf16 - ref)))

    print("KERNEL_OK")
</pallas_src>

<mosaic_0001>
module attributes {stable_mosaic.version = 11 : i64} {
  func.func @_seg_head_kernel(%arg0: i32, %arg1: i32, %arg2: memref<1x8x16x4xf32, #tpu.memory_space<vmem>>, %arg3: memref<1x1x16x4xf32, #tpu.memory_space<vmem>>, %arg4: memref<1x1x16x4xf32, #tpu.memory_space<vmem>>, %arg5: memref<36x32xf32, #tpu.memory_space<vmem>>, %arg6: memref<1x32xf32, #tpu.memory_space<vmem>>, %arg7: memref<8x32xf32, #tpu.memory_space<vmem>>, %arg8: memref<8x1xf32, #tpu.memory_space<vmem>>, %arg9: memref<1x8x128xf32, #tpu.memory_space<vmem>>, %arg10: memref<10x18x4xf32, #tpu.memory_space<vmem>>, %arg11: memref<8x16x36xf32, #tpu.memory_space<vmem>>) attributes {dimension_semantics = [#tpu.dimension_semantics<parallel>, #tpu.dimension_semantics<parallel>], iteration_bounds = array<i64: 2, 2>, scalar_prefetch = 0 : i64, scratch_operands = 2 : i64, tpu.core_type = #tpu.core_type<tc>, window_params = [{transform_indices = @transform_0, window_bounds = array<i64: 1, 8, 16, 4>}, {transform_indices = @transform_1, window_bounds = array<i64: 1, 1, 16, 4>}, {transform_indices = @transform_2, window_bounds = array<i64: 1, 1, 16, 4>}, {pipeline_mode = #tpu.pipeline_mode<synchronous>, transform_indices = @transform_3, window_bounds = array<i64: 36, 32>}, {pipeline_mode = #tpu.pipeline_mode<synchronous>, transform_indices = @transform_4, window_bounds = array<i64: 1, 32>}, {pipeline_mode = #tpu.pipeline_mode<synchronous>, transform_indices = @transform_5, window_bounds = array<i64: 8, 32>}, {pipeline_mode = #tpu.pipeline_mode<synchronous>, transform_indices = @transform_6, window_bounds = array<i64: 8, 1>}, {transform_indices = @transform_7, window_bounds = array<i64: 1, 8, 128>}]} {
    %cst = arith.constant 0.000000e+00 : f32
    %0 = vector.broadcast %cst : f32 to vector<10x1x4xf32>
    %c0 = arith.constant 0 : index
    %c0_0 = arith.constant 0 : index
    %c0_1 = arith.constant 0 : index
    %1 = vector.load %arg10[%c0, %c0_0, %c0_1] : memref<10x18x4xf32, #tpu.memory_space<vmem>>, vector<10x1x4xf32>
    tpu.vector_store %arg10[%c0, %c0_0, %c0_1], %0 {strides = array<i32>} : memref<10x18x4xf32, #tpu.memory_space<vmem>>, vector<10x1x4xf32>,
    %c0_2 = arith.constant 0 : index
    %c17 = arith.constant 17 : index
    %c0_3 = arith.constant 0 : index
    %2 = vector.load %arg10[%c0_2, %c17, %c0_3] : memref<10x18x4xf32, #tpu.memory_space<vmem>>, vector<10x1x4xf32>
    tpu.vector_store %arg10[%c0_2, %c17, %c0_3], %0 {strides = array<i32>} : memref<10x18x4xf32, #tpu.memory_space<vmem>>, vector<10x1x4xf32>,
    %c0_4 = arith.constant 0 : index
    %c0_5 = arith.constant 0 : index
    %c0_6 = arith.constant 0 : index
    %c0_7 = arith.constant 0 : index
    %3 = vector.load %arg2[%c0_4, %c0_5, %c0_6, %c0_7] : memref<1x8x16x4xf32, #tpu.memory_space<vmem>>, vector<1x8x16x4xf32>
    %4 = vector.shape_cast %3 : vector<1x8x16x4xf32> to vector<8x16x4xf32>
    %c1 = arith.constant 1 : index
    %c1_8 = arith.constant 1 : index
    %c0_9 = arith.constant 0 : index
    %5 = vector.load %arg10[%c1, %c1_8, %c0_9] : memref<10x18x4xf32, #tpu.memory_space<vmem>>, vector<8x16x4xf32>
    tpu.vector_store %arg10[%c1, %c1_8, %c0_9], %4 {strides = array<i32>} : memref<10x18x4xf32, #tpu.memory_space<vmem>>, vector<8x16x4xf32>,
    %c0_i32 = arith.constant 0 : i32
    %6 = arith.cmpi sgt, %arg1, %c0_i32 : i32
    %7 = arith.extui %6 : i1 to i32
    %c0_i32_10 = arith.constant 0 : i32
    %8 = arith.cmpi ne, %7, %c0_i32_10 : i32
    scf.if %8 {
      %c0_78 = arith.constant 0 : index
      %c0_79 = arith.constant 0 : index
      %c0_80 = arith.constant 0 : index
      %c0_81 = arith.constant 0 : index
      %52 = vector.load %arg3[%c0_78, %c0_79, %c0_80, %c0_81] : memref<1x1x16x4xf32, #tpu.memory_space<vmem>>, vector<1x1x16x4xf32>
      %53 = vector.shape_cast %52 : vector<1x1x16x4xf32> to vector<1x16x4xf32>
      %c0_82 = arith.constant 0 : index
      %c1_83 = arith.constant 1 : index
      %c0_84 = arith.constant 0 : index
      %54 = vector.load %arg10[%c0_82, %c1_83, %c0_84] : memref<10x18x4xf32, #tpu.memory_space<vmem>>, vector<1x16x4xf32>
      tpu.vector_store %arg10[%c0_82, %c1_83, %c0_84], %53 {strides = array<i32>} : memref<10x18x4xf32, #tpu.memory_space<vmem>>, vector<1x16x4xf32>,
    } else {
    }
    %c0_i32_11 = arith.constant 0 : i32
    %9 = arith.cmpi eq, %arg1, %c0_i32_11 : i32
    %10 = arith.extui %9 : i1 to i32
    %c0_i32_12 = arith.constant 0 : i32
    %11 = arith.cmpi ne, %10, %c0_i32_12 : i32
    scf.if %11 {
      %cst_78 = arith.constant 0.000000e+00 : f32
      %52 = vector.broadcast %cst_78 : f32 to vector<1x16x4xf32>
      %c0_79 = arith.constant 0 : index
      %c1_80 = arith.constant 1 : index
      %c0_81 = arith.constant 0 : index
      %53 = vector.load %arg10[%c0_79, %c1_80, %c0_81] : memref<10x18x4xf32, #tpu.memory_space<vmem>>, vector<1x16x4xf32>
      tpu.vector_store %arg10[%c0_79, %c1_80, %c0_81], %52 {strides = array<i32>} : memref<10x18x4xf32, #tpu.memory_space<vmem>>, vector<1x16x4xf32>,
    } else {
    }
    %c1_i32 = arith.constant 1 : i32
    %12 = arith.cmpi slt, %arg1, %c1_i32 : i32
    %13 = arith.extui %12 : i1 to i32
    %c0_i32_13 = arith.constant 0 : i32
    %14 = arith.cmpi ne, %13, %c0_i32_13 : i32
    scf.if %14 {
      %c0_78 = arith.constant 0 : index
      %c0_79 = arith.constant 0 : index
      %c0_80 = arith.constant 0 : index
      %c0_81 = arith.constant 0 : index
      %52 = vector.load %arg4[%c0_78, %c0_79, %c0_80, %c0_81] : memref<1x1x16x4xf32, #tpu.memory_space<vmem>>, vector<1x1x16x4xf32>
      %53 = vector.shape_cast %52 : vector<1x1x16x4xf32> to vector<1x16x4xf32>
      %c9 = arith.constant 9 : index
      %c1_82 = arith.constant 1 : index
      %c0_83 = arith.constant 0 : index
      %54 = vector.load %arg10[%c9, %c1_82, %c0_83] : memref<10x18x4xf32, #tpu.memory_space<vmem>>, vector<1x16x4xf32>
      tpu.vector_store %arg10[%c9, %c1_82, %c0_83], %53 {strides = array<i32>} : memref<10x18x4xf32, #tpu.memory_space<vmem>>, vector<1x16x4xf32>,
    } else {
    }
    %c1_i32_14 = arith.constant 1 : i32
    %15 = arith.cmpi eq, %arg1, %c1_i32_14 : i32
    %16 = arith.extui %15 : i1 to i32
    %c0_i32_15 = arith.constant 0 : i32
    %17 = arith.cmpi ne, %16, %c0_i32_15 : i32
    scf.if %17 {
      %cst_78 = arith.constant 0.000000e+00 : f32
      %52 = vector.broadcast %cst_78 : f32 to vector<1x16x4xf32>
      %c9 = arith.constant 9 : index
      %c1_79 = arith.constant 1 : index
      %c0_80 = arith.constant 0 : index
      %53 = vector.load %arg10[%c9, %c1_79, %c0_80] : memref<10x18x4xf32, #tpu.memory_space<vmem>>, vector<1x16x4xf32>
      tpu.vector_store %arg10[%c9, %c1_79, %c0_80], %52 {strides = array<i32>} : memref<10x18x4xf32, #tpu.memory_space<vmem>>, vector<1x16x4xf32>,
    } else {
    }
    %c0_16 = arith.constant 0 : index
    %c0_17 = arith.constant 0 : index
    %c0_18 = arith.constant 0 : index
    %18 = vector.load %arg10[%c0_16, %c0_17, %c0_18] : memref<10x18x4xf32, #tpu.memory_space<vmem>>, vector<8x16x4xf32>
    %c0_19 = arith.constant 0 : index
    %c0_20 = arith.constant 0 : index
    %c0_21 = arith.constant 0 : index
    %19 = vector.load %arg11[%c0_19, %c0_20, %c0_21] : memref<8x16x36xf32, #tpu.memory_space<vmem>>, vector<8x16x4xf32>
    tpu.vector_store %arg11[%c0_19, %c0_20, %c0_21], %18 {strides = array<i32>} : memref<8x16x36xf32, #tpu.memory_space<vmem>>, vector<8x16x4xf32>,
    %c0_22 = arith.constant 0 : index
    %c1_23 = arith.constant 1 : index
    %c0_24 = arith.constant 0 : index
    %20 = vector.load %arg10[%c0_22, %c1_23, %c0_24] : memref<10x18x4xf32, #tpu.memory_space<vmem>>, vector<8x16x4xf32>
    %c0_25 = arith.constant 0 : index
    %c0_26 = arith.constant 0 : index
    %c4 = arith.constant 4 : index
    %21 = vector.load %arg11[%c0_25, %c0_26, %c4] : memref<8x16x36xf32, #tpu.memory_space<vmem>>, vector<8x16x4xf32>
    tpu.vector_store %arg11[%c0_25, %c0_26, %c4], %20 {strides = array<i32>} : memref<8x16x36xf32, #tpu.memory_space<vmem>>, vector<8x16x4xf32>,
    %c0_27 = arith.constant 0 : index
    %c2 = arith.constant 2 : index
    %c0_28 = arith.constant 0 : index
    %22 = vector.load %arg10[%c0_27, %c2, %c0_28] : memref<10x18x4xf32, #tpu.memory_space<vmem>>, vector<8x16x4xf32>
    %c0_29 = arith.constant 0 : index
    %c0_30 = arith.constant 0 : index
    %c8 = arith.constant 8 : index
    %23 = vector.load %arg11[%c0_29, %c0_30, %c8] : memref<8x16x36xf32, #tpu.memory_space<vmem>>, vector<8x16x4xf32>
    tpu.vector_store %arg11[%c0_29, %c0_30, %c8], %22 {strides = array<i32>} : memref<8x16x36xf32, #tpu.memory_space<vmem>>, vector<8x16x4xf32>,
    %c1_31 = arith.constant 1 : index
    %c0_32 = arith.constant 0 : index
    %c0_33 = arith.constant 0 : index
    %24 = vector.load %arg10[%c1_31, %c0_32, %c0_33] : memref<10x18x4xf32, #tpu.memory_space<vmem>>, vector<8x16x4xf32>
    %c0_34 = arith.constant 0 : index
    %c0_35 = arith.constant 0 : index
    %c12 = arith.constant 12 : index
    %25 = vector.load %arg11[%c0_34, %c0_35, %c12] : memref<8x16x36xf32, #tpu.memory_space<vmem>>, vector<8x16x4xf32>
    tpu.vector_store %arg11[%c0_34, %c0_35, %c12], %24 {strides = array<i32>} : memref<8x16x36xf32, #tpu.memory_space<vmem>>, vector<8x16x4xf32>,
    %c1_36 = arith.constant 1 : index
    %c1_37 = arith.constant 1 : index
    %c0_38 = arith.constant 0 : index
    %26 = vector.load %arg10[%c1_36, %c1_37, %c0_38] : memref<10x18x4xf32, #tpu.memory_space<vmem>>, vector<8x16x4xf32>
    %c0_39 = arith.constant 0 : index
    %c0_40 = arith.constant 0 : index
    %c16 = arith.constant 16 : index
    %27 = vector.load %arg11[%c0_39, %c0_40, %c16] : memref<8x16x36xf32, #tpu.memory_space<vmem>>, vector<8x16x4xf32>
    tpu.vector_store %arg11[%c0_39, %c0_40, %c16], %26 {strides = array<i32>} : memref<8x16x36xf32, #tpu.memory_space<vmem>>, vector<8x16x4xf32>,
    %c1_41 = arith.constant 1 : index
    %c2_42 = arith.constant 2 : index
    %c0_43 = arith.constant 0 : index
    %28 = vector.load %arg10[%c1_41, %c2_42, %c0_43] : memref<10x18x4xf32, #tpu.memory_space<vmem>>, vector<8x16x4xf32>
    %c0_44 = arith.constant 0 : index
    %c0_45 = arith.constant 0 : index
    %c20 = arith.constant 20 : index
    %29 = vector.load %arg11[%c0_44, %c0_45, %c20] : memref<8x16x36xf32, #tpu.memory_space<vmem>>, vector<8x16x4xf32>
    tpu.vector_store %arg11[%c0_44, %c0_45, %c20], %28 {strides = array<i32>} : memref<8x16x36xf32, #tpu.memory_space<vmem>>, vector<8x16x4xf32>,
    %c2_46 = arith.constant 2 : index
    %c0_47 = arith.constant 0 : index
    %c0_48 = arith.constant 0 : index
    %30 = vector.load %arg10[%c2_46, %c0_47, %c0_48] : memref<10x18x4xf32, #tpu.memory_space<vmem>>, vector<8x16x4xf32>
    %c0_49 = arith.constant 0 : index
    %c0_50 = arith.constant 0 : index
    %c24 = arith.constant 24 : index
    %31 = vector.load %arg11[%c0_49, %c0_50, %c24] : memref<8x16x36xf32, #tpu.memory_space<vmem>>, vector<8x16x4xf32>
    tpu.vector_store %arg11[%c0_49, %c0_50, %c24], %30 {strides = array<i32>} : memref<8x16x36xf32, #tpu.memory_space<vmem>>, vector<8x16x4xf32>,
    %c2_51 = arith.constant 2 : index
    %c1_52 = arith.constant 1 : index
    %c0_53 = arith.constant 0 : index
    %32 = vector.load %arg10[%c2_51, %c1_52, %c0_53] : memref<10x18x4xf32, #tpu.memory_space<vmem>>, vector<8x16x4xf32>
    %c0_54 = arith.constant 0 : index
    %c0_55 = arith.constant 0 : index
    %c28 = arith.constant 28 : index
    %33 = vector.load %arg11[%c0_54, %c0_55, %c28] : memref<8x16x36xf32, #tpu.memory_space<vmem>>, vector<8x16x4xf32>
    tpu.vector_store %arg11[%c0_54, %c0_55, %c28], %32 {strides = array<i32>} : memref<8x16x36xf32, #tpu.memory_space<vmem>>, vector<8x16x4xf32>,
    %c2_56 = arith.constant 2 : index
    %c2_57 = arith.constant 2 : index
    %c0_58 = arith.constant 0 : index
    %34 = vector.load %arg10[%c2_56, %c2_57, %c0_58] : memref<10x18x4xf32, #tpu.memory_space<vmem>>, vector<8x16x4xf32>
    %c0_59 = arith.constant 0 : index
    %c0_60 = arith.constant 0 : index
    %c32 = arith.constant 32 : index
    %35 = vector.load %arg11[%c0_59, %c0_60, %c32] : memref<8x16x36xf32, #tpu.memory_space<vmem>>, vector<8x16x4xf32>
    tpu.vector_store %arg11[%c0_59, %c0_60, %c32], %34 {strides = array<i32>} : memref<8x16x36xf32, #tpu.memory_space<vmem>>, vector<8x16x4xf32>,
    %c0_61 = arith.constant 0 : index
    %c0_62 = arith.constant 0 : index
    %c0_63 = arith.constant 0 : index
    %36 = vector.load %arg11[%c0_61, %c0_62, %c0_63] : memref<8x16x36xf32, #tpu.memory_space<vmem>>, vector<8x16x36xf32>
    %37 = vector.shape_cast %36 : vector<8x16x36xf32> to vector<128x36xf32>
    %c0_64 = arith.constant 0 : index
    %c0_65 = arith.constant 0 : index
    %38 = vector.load %arg5[%c0_64, %c0_65] : memref<36x32xf32, #tpu.memory_space<vmem>>, vector<36x32xf32>
    %cst_66 = arith.constant dense<0.000000e+00> : vector<128x32xf32>
    %39 = tpu.matmul %37, %38, %cst_66 {dimension_numbers = #tpu.dot_dimension_numbers<[1], [0], [0], [1], [0, 0, 1, 1], [], []>} : vector<128x36xf32>, vector<36x32xf32>, vector<128x32xf32> -> vector<128x32xf32>
    %c0_67 = arith.constant 0 : index
    %c0_68 = arith.constant 0 : index
    %40 = vector.load %arg6[%c0_67, %c0_68] : memref<1x32xf32, #tpu.memory_space<vmem>>, vector<1x32xf32>
    %41 = vector.broadcast %40 : vector<1x32xf32> to vector<128x32xf32>
    %42 = arith.addf %39, %41 : vector<128x32xf32>
    %cst_69 = arith.constant 0.000000e+00 : f32
    %43 = vector.broadcast %cst_69 : f32 to vector<128x32xf32>
    %44 = arith.maximumf %42, %43 : vector<128x32xf32>
    %c0_70 = arith.constant 0 : index
    %c0_71 = arith.constant 0 : index
    %45 = vector.load %arg7[%c0_70, %c0_71] : memref<8x32xf32, #tpu.memory_space<vmem>>, vector<8x32xf32>
    %cst_72 = arith.constant dense<0.000000e+00> : vector<8x128xf32>
    %46 = tpu.matmul %45, %44, %cst_72 {dimension_numbers = #tpu.dot_dimension_numbers<[1], [1], [0], [0], [0, 0, 1, 0], [], []>} : vector<8x32xf32>, vector<128x32xf32>, vector<8x128xf32> -> vector<8x128xf32>
    %c0_73 = arith.constant 0 : index
    %c0_74 = arith.constant 0 : index
    %47 = vector.load %arg8[%c0_73, %c0_74] : memref<8x1xf32, #tpu.memory_space<vmem>>, vector<8x1xf32>
    %48 = vector.broadcast %47 : vector<8x1xf32> to vector<8x128xf32>
    %49 = arith.addf %46, %48 : vector<8x128xf32>
    %50 = vector.shape_cast %49 : vector<8x128xf32> to vector<1x8x128xf32>
    %c0_75 = arith.constant 0 : index
    %c0_76 = arith.constant 0 : index
    %c0_77 = arith.constant 0 : index
    %51 = vector.load %arg9[%c0_75, %c0_76, %c0_77] : memref<1x8x128xf32, #tpu.memory_space<vmem>>, vector<1x8x128xf32>
    tpu.vector_store %arg9[%c0_75, %c0_76, %c0_77], %50 {strides = array<i32>} : memref<1x8x128xf32, #tpu.memory_space<vmem>>, vector<1x8x128xf32>,
    return
  }
  func.func @transform_0(%arg0: i32, %arg1: i32) -> (i32, i32, i32, i32) {
    %c0_i32 = arith.constant 0 : i32
    %c0_i32_0 = arith.constant 0 : i32
    %c0_i32_1 = arith.constant 0 : i32
    return %arg0, %arg1, %c0_i32, %c0_i32_0 : i32, i32, i32, i32
  }
  func.func @transform_1(%arg0: i32, %arg1: i32) -> (i32, i32, i32, i32) {
    %c8_i32 = arith.constant 8 : i32
    %0 = arith.muli %arg1, %c8_i32 : i32
    %c1_i32 = arith.constant 1 : i32
    %1 = arith.subi %0, %c1_i32 : i32
    %c0_i32 = arith.constant 0 : i32
    %2 = arith.maxsi %1, %c0_i32 : i32
    %c0_i32_0 = arith.constant 0 : i32
    %c0_i32_1 = arith.constant 0 : i32
    %c0_i32_2 = arith.constant 0 : i32
    return %arg0, %2, %c0_i32_0, %c0_i32_1 : i32, i32, i32, i32
  }
  func.func @transform_2(%arg0: i32, %arg1: i32) -> (i32, i32, i32, i32) {
    %c1_i32 = arith.constant 1 : i32
    %0 = arith.addi %arg1, %c1_i32 : i32
    %c8_i32 = arith.constant 8 : i32
    %1 = arith.muli %0, %c8_i32 : i32
    %c15_i32 = arith.constant 15 : i32
    %2 = arith.minsi %1, %c15_i32 : i32
    %c0_i32 = arith.constant 0 : i32
    %c0_i32_0 = arith.constant 0 : i32
    %c0_i32_1 = arith.constant 0 : i32
    return %arg0, %2, %c0_i32, %c0_i32_0 : i32, i32, i32, i32
  }
  func.func @transform_3(%arg0: i32, %arg1: i32) -> (i32, i32) {
    %c0_i32 = arith.constant 0 : i32
    %c0_i32_0 = arith.constant 0 : i32
    %c0_i32_1 = arith.constant 0 : i32
    return %c0_i32, %c0_i32_0 : i32, i32
  }
  func.func @transform_4(%arg0: i32, %arg1: i32) -> (i32, i32) {
    %c0_i32 = arith.constant 0 : i32
    %c0_i32_0 = arith.constant 0 : i32
    %c0_i32_1 = arith.constant 0 : i32
    return %c0_i32, %c0_i32_0 : i32, i32
  }
  func.func @transform_5(%arg0: i32, %arg1: i32) -> (i32, i32) {
    %c0_i32 = arith.constant 0 : i32
    %c0_i32_0 = arith.constant 0 : i32
    %c0_i32_1 = arith.constant 0 : i32
    return %c0_i32, %c0_i32_0 : i32, i32
  }
  func.func @transform_6(%arg0: i32, %arg1: i32) -> (i32, i32) {
    %c0_i32 = arith.constant 0 : i32
    %c0_i32_0 = arith.constant 0 : i32
    %c0_i32_1 = arith.constant 0 : i32
    return %c0_i32, %c0_i32_0 : i32, i32
  }
  func.func @transform_7(%arg0: i32, %arg1: i32) -> (i32, i32, i32) {
    %c0_i32 = arith.constant 0 : i32
    %c0_i32_0 = arith.constant 0 : i32
    return %arg0, %c0_i32, %arg1 : i32, i32, i32
  }
}

</mosaic_0001>

<bundles_post_ra>
// kernel: tpu_custom_call.1
= control target key start
LH: loop header
LB: loop body
LE: loop exit
PB: predicated region body
PF: predicated region fallthrough
CT: control target
= control target key end

     0   :  { %s3052_s0 = inlined_call_operand.vmem [shape: f32[2,16,16,4], index: 0, kind: input, shape index: {}]   ;;  %s3053_s1 = inlined_call_operand.vmem [shape: f32[2,16,16,4], index: 1, kind: input, shape index: {}]   ;;  %s3054_s2 = inlined_call_operand.vmem [shape: f32[2,16,16,4], index: 2, kind: input, shape index: {}]   ;;  %s3055_s3 = inlined_call_operand.vmem [shape: f32[36,32], index: 3, kind: input, shape index: {}]   ;;  %s3056_s4 = inlined_call_operand.vmem [shape: f32[1,32], index: 4, kind: input, shape index: {}]   ;;  %s3057_s5 = inlined_call_operand.vmem [shape: f32[8,32], index: 5, kind: input, shape index: {}]   ;;  %s3058_s6 = inlined_call_operand.vmem [shape: f32[8,1], index: 6, kind: input, shape index: {}]   ;;  %s3059_s7 = inlined_call_operand.hbm [shape: f32[2,8,256], index: 7, kind: output, shape index: {}]  }
   0x1   :  { %3065 = sst [smem:[#allocation11_spill]] %s3052_s0 }
   0x2   :  { %12 = vsyncpa [#allocation5], 0 }
   0x3   :  { %14 = vsyncpa [#allocation5 + $0x1], 0  ;;  %s2308_s24 = smov 0   ;;  %s2310_s25 = smov 0  }
   0x4   :  { %s2312_s26 = smov 0   ;;  %s2314_s27 = smov 0  }
   0x5   :  { %s2316_s28 = smov 0   ;;  %s2318_s29 = smov 0  }
   0x6   :  { %s2320_s30 = smov 0   ;;  %s2322_s8 = smov 0  }
   0x7 LB: > { %3066 = sst [smem:[#allocation7_spill]] %s2243_s29  ;;  %s1839_s9 = sadd.s32 4294967295, %s2251_s8   ;;  %s2251_s8 = sphi %s2322_s8, %s20_s8   ;;  %s2247_s30 = sphi %s2320_s30, %s3080_s30   ;;  %s2243_s29 = sphi %s2318_s29, %s3079_s29   ;;  %s2239_s28 = sphi %s2316_s28, %s3078_s28   ;;  %s2235_s27 = sphi %s2314_s27, %s3077_s27   ;;  %s2231_s26 = sphi %s2312_s26, %s3083_s26   ;;  %s2227_s25 = sphi %s2310_s25, %s3082_s25   ;;  %s2223_s24 = sphi %s2308_s24, %s3081_s24  }
   0x8   : > { %3067 = sst [smem:[#allocation8_spill]] %s2247_s30  ;;  %s1840_s10 = sadd.s32 4294967294, %s2251_s8  }
   0x9   : > { %s29_s11 = sadd.s32 1, %s2243_s29  ;;  %s32_s12 = sadd.s32 1, %s2247_s30 }
   0xa   : > { %p30_p0 = scmp.ge.s32.totalorder %s29_s11, 2  ;;  %p235_p1 = scmp.ne.s32.totalorder %s2231_s26, %s2227_s25 }
   0xb   : > { %p236_p2 = scmp.eq.s32.totalorder %s1839_s9, 3  ;;  %p241_p5 = scmp.ne.s32.totalorder %s2227_s25, %s2223_s24 }
   0xc   : > { %s3085_s11 = smov (%p30_p0, %s29_s11), 0  ;;  %s3087_s12 = smov (!%p30_p0, %s32_s12), %s2247_s30 }
   0xd   : > { %3068 = sst [smem:[#allocation9_spill]] %s3085_s11  ;;  %s221_s13 = ssub.s32 %s2243_s29, %s3085_s11 }
   0xe   : > { %p2359_p3 = por %p236_p2, %p235_p1  ;;  %p34_p4 = scmp.ge.s32.totalorder %s3087_s12, 2 }
   0xf   : > { %p242_p6 = scmp.eq.s32.totalorder %s1840_s10, 3  ;;  %p1849_p7 = scmp.ge.s32.totalorder %s2251_s8, 1 }
  0x10   : > { %s3089_s12 = smov (%p34_p4, %s3087_s12), 0  ;;  %p326_p9 = scmp.lt.s32.totalorder %s2251_s8, 5 }
  0x11   : > { %3070 = sst [smem:[#allocation10_spill]] %s3089_s12  ;;  %p2368_p8 = por %p242_p6, %p241_p5 }
  0x12   : > { %s220_s16 = ssub.s32 %s2247_s30, %s3089_s12  ;;  %s225_s17 = sadd.s32 1, %s2231_s26 }
  0x13   : > { %s222_s18 = sor.u32 %s221_s13, %s220_s16  ;;  %p327_p10 = pnand %p1849_p7, %p326_p9 }
  0x14   : > { %p223_p11 = scmp.eq.s32.totalorder %s222_s18, 0  ;;  %s3060_s20 = sand.u32 (!%p327_p10), 1, %s2227_s25   ;;  %vm434_vm0 = vcmask (!%p327_p10), 24576   ;;  %v2253_v0 = vmov (!%p327_p10), 0.0   ;;  %vm472_vm1 = vcmask (!%p327_p10), 31744  }
  0x15   : > { %330 = sbr.rel (%p327_p10) target bundleno = 903 (0x387), region = 48  ;;  %s2381_s21 = sshll.u32 (!%p327_p10), %s2235_s27, 3  ;;  %435 = vst.msk [vmem:[#allocation2] sm:$0x1] (!%p327_p10), %vm434_vm0, %v2253_v0  ;;  %436 = vst.msk [vmem:[#allocation2 + $0x18] sm:$0x1] (!%p327_p10), %vm434_vm0, %v2253_v0 }
  0x16   : > { %s2377_s19 = scalar_select %p223_p11, %s2231_s26, %s225_s17  }
  0x17   : > { %s2385_s22 = sshll.u32 (!%p327_p10), %s3060_s20, 3  ;;  %437 = vst.msk [vmem:[#allocation2 + $0x30] sm:$0x1] (!%p327_p10), %vm434_vm0, %v2253_v0  ;;  %438 = vst.msk [vmem:[#allocation2 + $0x48] sm:$0x1] (!%p327_p10), %vm434_vm0, %v2253_v0  ;;  %p390_p12 = scmp.lt.s32.totalorder (!%p327_p10), %s2239_s28, 1 }
  0x18   : > { %439 = vst.msk [vmem:[#allocation2 + $0x60] sm:$0x1] (!%p327_p10), %vm434_vm0, %v2253_v0  ;;  %440 = vst.msk [vmem:[#allocation2 + $0x78] sm:$0x1] (!%p327_p10), %vm434_vm0, %v2253_v0  ;;  %p392_p13 = scmp.lt.s32.totalorder (!%p327_p10), %s2381_s21, 15  ;;  %s1856_s13 = sadd.s32 (!%p327_p10), 4294967295, %s2381_s21 }
  0x19   : > { %441 = vst.msk [vmem:[#allocation2 + $0x90] sm:$0x1] (!%p327_p10), %vm434_vm0, %v2253_v0  ;;  %442 = vst.msk [vmem:[#allocation2 + $0xa8] sm:$0x1] (!%p327_p10), %vm434_vm0, %v2253_v0  ;;  %p402_p0 = scmp.gt.s32.totalorder (!%p327_p10), %s1856_s13, 0  ;;  %p1857_p1 = scmp.lt.s32.totalorder (!%p327_p10), %s1856_s13, 15 }
  0x1a   : > { %443 = vst.msk [vmem:[#allocation2 + $0xc0] sm:$0x1] (!%p327_p10), %vm434_vm0, %v2253_v0  ;;  %444 = vst.msk [vmem:[#allocation2 + $0xd8] sm:$0x1] (!%p327_p10), %vm434_vm0, %v2253_v0  ;;  %s1923_s20 = sadd.s32 (!%p327_p10), 8, %s2381_s21  ;;  %s3072_s0 = sld [smem:[#allocation11_spill]] (!%p327_p10) }
  0x1b   : > { %445 = vst.msk [vmem:[#allocation2 + $0x11] sm:$0x1] (!%p327_p10), %vm434_vm0, %v2253_v0  ;;  %446 = vst.msk [vmem:[#allocation2 + $0x29] sm:$0x1] (!%p327_p10), %vm434_vm0, %v2253_v0  ;;  %p2441_p2 = scmp.lt.s32.totalorder (!%p327_p10), %s1923_s20, 15  ;;  %p1872_p4 = scmp.le.s32.totalorder (!%p327_p10), %s2235_s27, 0 }
  0x1c   : > { %447 = vst.msk [vmem:[#allocation2 + $0x41] sm:$0x1] %vm434_vm0, %v2253_v0  ;;  %448 = vst.msk [vmem:[#allocation2 + $0x59] sm:$0x1] %vm434_vm0, %v2253_v0  ;;  %s391_s23 = scalar_select %p390_p12, %s2239_s28, 1 }
  0x1d   : > { %449 = vst.msk [vmem:[#allocation2 + $0x71] sm:$0x1] %vm434_vm0, %v2253_v0  ;;  %450 = vst.msk [vmem:[#allocation2 + $0x89] sm:$0x1] %vm434_vm0, %v2253_v0  ;;  %s393_s9 = scalar_select %p392_p13, %s2381_s21, 15 }
  0x1e   : > { %451 = vst.msk [vmem:[#allocation2 + $0xa1] sm:$0x1] %vm434_vm0, %v2253_v0  ;;  %452 = vst.msk [vmem:[#allocation2 + $0xb9] sm:$0x1] %vm434_vm0, %v2253_v0  ;;  %s2431_s10 = sshll.u32 %s391_s23, 5  ;;  %s3091_s20 = smov (!%p2441_p2, %s1923_s20), 15 }
  0x1f   : > { %453 = vst.msk [vmem:[#allocation2 + $0xd1] sm:$0x1] %vm434_vm0, %v2253_v0  ;;  %454 = vst.msk [vmem:[#allocation2 + $0xe9] sm:$0x1] %vm434_vm0, %v2253_v0  ;;  %s1852_s16 = sshll.u32 %s393_s9, 1  ;;  %s3095_s20 = smov (!%p2441_p2, %s3091_s20), 15 }
  0x20   : > { %s396_s17 = sadd.s32 %s2431_s10, %s1852_s16  ;;  %s1869_s21 = sshll.u32 %s3095_s20, 1 }
  0x21   : > { %s1854_s18 = sshll.u32 %s396_s17, 3  ;;  %s427_s16 = sadd.s32 %s1869_s21, %s2431_s10 }
  0x22   : > { %s2439_s30 = scalar_lea.vmem %s3072_s0, %s1854_s18 }
  0x23   : > { %s403_s9 = scalar_select %p402_p0, %s1856_s13, 0  ;;  %v455_v1 = vld [vmem:[%s2439_s30] sm:$0xff]  ;;  %v456_v2 = vld [vmem:[%s2439_s30 + $0x8] sm:$0xff]  ;;  %v457_v3 = vld [vmem:[%s2439_s30 + $0x10] sm:$0xff] }
  0x24   : > { %473 = vst.msk [vmem:[#allocation2 + $0x19] sm:$0xff] %vm472_vm1, %v455_v1  ;;  %474 = vst.msk [vmem:[#allocation2 + $0x21] sm:$0xff] %vm472_vm1, %v456_v2  ;;  %v458_v4 = vld [vmem:[%s2439_s30 + $0x18] sm:$0xff]  ;;  %v459_v5 = vld [vmem:[%s2439_s30 + $0x20] sm:$0xff] }
  0x25   : > { %475 = vst.msk [vmem:[#allocation2 + $0x31] sm:$0xff] %vm472_vm1, %v457_v3  ;;  %v460_v6 = vld [vmem:[%s2439_s30 + $0x28] sm:$0xff]  ;;  %s3093_s9 = smov (!%p1857_p1, %s403_s9), 15  ;;  %476 = vst.msk [vmem:[#allocation2 + $0x39] sm:$0xff] %vm472_vm1, %v458_v4  ;;  %v461_v7 = vld [vmem:[%s2439_s30 + $0x30] sm:$0xff]  ;;  %492 = sbr.rel (%p1872_p4) target bundleno = 45 (0x2d), region = 52 }
  0x26   : > { %477 = vst.msk [vmem:[#allocation2 + $0x49] sm:$0xff] %vm472_vm1, %v459_v5  ;;  %478 = vst.msk [vmem:[#allocation2 + $0x51] sm:$0xff] %vm472_vm1, %v460_v6  ;;  %v462_v8 = vld [vmem:[%s2439_s30 + $0x38] sm:$0xff]  ;;  %v463_v9 = vld [vmem:[%s2439_s30 + $0x40] sm:$0xff]  ;;  %s1862_s11 = sshll.u32 %s3093_s9, 1  ;;  %s1871_s9 = sshll.u32 %s427_s16, 3 }
  0x27   : > { %479 = vst.msk [vmem:[#allocation2 + $0x61] sm:$0xff] %vm472_vm1, %v461_v7  ;;  %480 = vst.msk [vmem:[#allocation2 + $0x69] sm:$0xff] %vm472_vm1, %v462_v8  ;;  %v464_v10 = vld [vmem:[%s2439_s30 + $0x48] sm:$0xff]  ;;  %v465_v11 = vld [vmem:[%s2439_s30 + $0x50] sm:$0xff]  ;;  %s410_s12 = sadd.s32 %s1862_s11, %s2431_s10  ;;  %s429_s20 = scalar_lea.vmem %s3054_s2, %s1871_s9 }
  0x28   : > { %481 = vst.msk [vmem:[#allocation2 + $0x79] sm:$0xff] %vm472_vm1, %v463_v9  ;;  %v466_v12 = vld [vmem:[%s2439_s30 + $0x58] sm:$0xff]  ;;  %482 = vst.msk [vmem:[#allocation2 + $0x81] sm:$0xff] %vm472_vm1, %v464_v10  ;;  %v467_v13 = vld [vmem:[%s2439_s30 + $0x60] sm:$0xff]  ;;  %s1864_s13 = sshll.u32 %s410_s12, 3  ;;  %s388_s11 = scalar_lea.vmem [#allocation4], %s2385_s22 }
  0x29   : > { %483 = vst.msk [vmem:[#allocation2 + $0x91] sm:$0xff] %vm472_vm1, %v465_v11  ;;  %484 = vst.msk [vmem:[#allocation2 + $0x99] sm:$0xff] %vm472_vm1, %v466_v12  ;;  %v468_v14 = vld [vmem:[%s2439_s30 + $0x68] sm:$0xff]  ;;  %v469_v15 = vld [vmem:[%s2439_s30 + $0x70] sm:$0xff]  ;;  %s412_s23 = scalar_lea.vmem %s3053_s1, %s1864_s13 }
  0x2a   : > { %485 = vst.msk [vmem:[#allocation2 + $0xa9] sm:$0xff] %vm472_vm1, %v467_v13  ;;  %486 = vst.msk [vmem:[#allocation2 + $0xb1] sm:$0xff] %vm472_vm1, %v468_v14  ;;  %v470_v16 = vld [vmem:[%s2439_s30 + $0x78] sm:$0xff]  ;;  %v493_v17 = vld [vmem:[%s412_s23] sm:$0xff] (!%p1872_p4) }
  0x2b   : > { %487 = vst.msk [vmem:[#allocation2 + $0xc1] sm:$0xff] %vm472_vm1, %v469_v15  ;;  %488 = vst.msk [vmem:[#allocation2 + $0xc9] sm:$0xff] %vm472_vm1, %v470_v16  ;;  %v494_v18 = vld [vmem:[%s412_s23 + $0x8] sm:$0xff] (!%p1872_p4) }
  0x2c   : > { %495 = vst.msk [vmem:[#allocation2 + $0x1] sm:$0xff] %vm472_vm1, %v493_v17  ;;  %496 = vst.msk [vmem:[#allocation2 + $0x9] sm:$0xff] %vm472_vm1, %v494_v18 }
  0x2d PF: > { %p1873_p5 = scmp.ne.s32.totalorder %s2235_s27, 0 }
  0x2e   : > { %v2254_v19 = vmov (!%p1873_p5), 0.0  }
  0x2f   : > { %500 = sbr.rel (%p1873_p5) target bundleno = 54 (0x36), region = 56  ;;  %501 = vst.msk [vmem:[#allocation2 + $0x1] sm:$0xff] (!%p1873_p5), %vm472_vm1, %v2254_v19  ;;  %502 = vst.msk [vmem:[#allocation2 + $0x9] sm:$0xff] (!%p1873_p5), %vm472_vm1, %v2254_v19 }
  0x36 PF: > { %p1874_p6 = scmp.ge.s32.totalorder %s2235_s27, 1 }
  0x37   : > { %v507_v20 = vld [vmem:[%s429_s20] sm:$0xff] (!%p1874_p6)  ;;  %v508_v21 = vld [vmem:[%s429_s20 + $0x8] sm:$0xff] (!%p1874_p6) }
  0x38   : > { %506 = sbr.rel (%p1874_p6) target bundleno = 63 (0x3f), region = 60  ;;  %510 = vst.msk [vmem:[#allocation2 + $0xd9] sm:$0xff] (!%p1874_p6), %vm472_vm1, %v507_v20  ;;  %511 = vst.msk [vmem:[#allocation2 + $0xe1] sm:$0xff] (!%p1874_p6), %vm472_vm1, %v508_v21 }
  0x3f PF: > { %p1875_p7 = scmp.ne.s32.totalorder %s2235_s27, 1 }
  0x40   : > { %v2255_v22 = vmov (!%p1875_p7), 0.0  }
  0x41   : > { %515 = sbr.rel (%p1875_p7) target bundleno = 72 (0x48), region = 64  ;;  %517 = vst.msk [vmem:[#allocation2 + $0xd9] sm:$0xff] (!%p1875_p7), %vm472_vm1, %v2255_v22  ;;  %518 = vst.msk [vmem:[#allocation2 + $0xe1] sm:$0xff] (!%p1875_p7), %vm472_vm1, %v2255_v22 }
  0x48 PF: > { %v551_v23 = vld [vmem:[#allocation2 + $0x1] sm:$0xff]  ;;  %s2256_s0 = smov 4   ;;  %s2257_s29 = smov 8   ;;  %v745_v25 = vld [vmem:[#allocation2 + $0x18] sm:$0xff]  ;;  %v552_v27 = vld [vmem:[#allocation2 + $0x9] sm:$0xff]  ;;  %vm1405_vm2 = vcmask 1043456  }
  0x49   : > { %v648_v24 = vld [vmem:[#allocation2 + $0x2] sm:$0xff]  ;;  %583 = vrot.lane.b32.xlu0 %v551_v23, %s2256_s0  ;;  %v649_v28 = vld [vmem:[#allocation2 + $0xa] sm:$0xff]  ;;  %537 = vst.msk [vmem:[#allocation3 + $0x10] sm:$0xff] %vm472_vm1, %v745_v25  ;;  %v2512_v30 = vld [vmem:[#allocation2 + $0x38] sm:$0xff]  ;;  %s2258_s30 = smov 12   ;;  %s2259_s10 = smov 16  }
  0x4a   : > { %680 = vrot.lane.b32.xlu1 %v648_v24, %s2257_s29  ;;  %v746_v26 = vld [vmem:[#allocation2 + $0x20] sm:$0xff]  ;;  %v2510_v29 = vld [vmem:[#allocation2 + $0x30] sm:$0xff]  ;;  %540 = vst.msk [vmem:[#allocation3 + $0x28] sm:$0xff] %vm472_vm1, %v2512_v30  ;;  %v2520_v31 = vld [vmem:[#allocation2 + $0x48] sm:$0xff]  ;;  %s2260_s17 = smov 20   ;;  %s2261_s12 = smov 24  }
  0x4b   : > { %538 = vst.msk [vmem:[#allocation3 + $0x18] sm:$0xff] %vm472_vm1, %v746_v26  ;;  %539 = vst.msk [vmem:[#allocation3 + $0x20] sm:$0xff] %vm472_vm1, %v2510_v29  ;;  %v2522_v32 = vld [vmem:[#allocation2 + $0x50] sm:$0xff]  ;;  %v2528_v33 = vld [vmem:[#allocation2 + $0x60] sm:$0xff]  ;;  %s2262_s21 = smov 28   ;;  %s2263_s18 = smov 32  }
  0x4c   : > { %541 = vst.msk [vmem:[#allocation3 + $0x30] sm:$0xff] %vm472_vm1, %v2520_v31  ;;  %542 = vst.msk [vmem:[#allocation3 + $0x38] sm:$0xff] %vm472_vm1, %v2522_v32  ;;  %v2530_v34 = vld [vmem:[#allocation2 + $0x68] sm:$0xff]  ;;  %v842_v35 = vld [vmem:[#allocation2 + $0x19] sm:$0xff]  ;;  %vm631_vm3 = vcmask 64544   ;;  %vm728_vm4 = vcmask 97344  }
  0x4d   : > { %585 = vrot.lane.b32.xlu0 %v552_v27, %s2256_s0  ;;  %543 = vst.msk [vmem:[#allocation3 + $0x40] sm:$0xff] %vm472_vm1, %v2528_v33  ;;  %544 = vst.msk [vmem:[#allocation3 + $0x48] sm:$0xff] %vm472_vm1, %v2530_v34  ;;  %v519_v36 = vld [vmem:[#allocation2] sm:$0xff]  ;;  %v2538_v37 = vld [vmem:[#allocation2 + $0x78] sm:$0xff]  ;;  %vm825_vm5 = vcmask 130144   ;;  %vm922_vm6 = vcmask 162944  }
  0x4e   : > { %682 = vrot.lane.b32.xlu1 %v649_v28, %s2257_s29  ;;  %v843_v38 = vld [vmem:[#allocation2 + $0x21] sm:$0xff]  ;;  %535 = vst.msk [vmem:[#allocation3] sm:$0xff] %vm472_vm1, %v519_v36  ;;  %545 = vst.msk [vmem:[#allocation3 + $0x50] sm:$0xff] %vm472_vm1, %v2538_v37  ;;  %v1346_v46 = vld [vmem:[%s3055_s3 + $0x10] sm:$0xff]  ;;  %vm1019_vm7 = vcmask 195744   ;;  %vm1117_vm8 = vcmask 228544  }
  0x4f   : > { %v2541_v39 = vld [vmem:[#allocation2 + $0x80] sm:$0xff]  ;;  %v520_v40 = vld [vmem:[#allocation2 + $0x8] sm:$0xff]  ;;  %v1347_v47 = vld [vmem:[%s3055_s3 + $0x18] sm:$0xff]  ;;  %vm1214_vm9 = vcmask 261344   ;;  %vm1311_vm10 = vcmask 294144   ;;  %vm1356_vm11 = vcmask 293888  }
  0x50   : > { %536 = vst.msk [vmem:[#allocation3 + $0x8] sm:$0xff] %vm472_vm1, %v520_v40  ;;  %546 = vst.msk [vmem:[#allocation3 + $0x58] sm:$0xff] %vm472_vm1, %v2541_v39  ;;  %v939_v41 = vld [vmem:[#allocation2 + $0x1a] sm:$0xff]  ;;  %v940_v42 = vld [vmem:[#allocation2 + $0x22] sm:$0xff]  ;;  %v2035_v49 = vpack.c.bf16 %v1347_v47, %v1346_v46  ;;  %vm1577_vm12 = vcmask 261120   ;;  %vm2265_vm14 = vmmov 0  }
  0x51   : > { %777 = vrot.lane.b32.xlu0 %v745_v25, %s2258_s30  ;;  %v1344_v43 = vld [vmem:[%s3055_s3] sm:$0xff]  ;;  %v1345_v44 = vld [vmem:[%s3055_s3 + $0x8] sm:$0xff]  ;;  %v2564_v48 = vld [vmem:[#allocation2 + $0x90] sm:$0xff]  ;;  %2028 = vmatprep.mubr.msk.f32.mxu1 %vm2265_vm14, %v2253_v0  ;;  %s1912_s9 = sshll.u32 %s2239_s28, 1 }
  0x52   : > { %779 = vrot.lane.b32.xlu1 %v746_v26, %s2258_s30  ;;  %v2031_v45 = vpack.c.bf16 %v1345_v44, %v1344_v43  ;;  %v2570_v50 = vld [vmem:[#allocation2 + $0x98] sm:$0xff]  ;;  %547 = vst.msk [vmem:[#allocation3 + $0x60] sm:$0xff] %vm472_vm1, %v2564_v48  ;;  %v1348_v53 = vld [vmem:[%s3055_s3 + $0x20] sm:$0xf]  ;;  %v2595_v56 = vld [vmem:[#allocation2 + $0xa8] sm:$0xff]  ;;  %s1712_s20 = sadd.s32 %s2235_s27, %s1912_s9  ;;  %s3076_s27 = sand.u32 1, %s2227_s25  }
  0x53   : > { %v1134_v51 = vld [vmem:[#allocation2 + $0x31] sm:$0xff]  ;;  %v1135_v52 = vld [vmem:[#allocation2 + $0x39] sm:$0xff]  ;;  %548 = vst.msk [vmem:[#allocation3 + $0x68] sm:$0xff] %vm472_vm1, %v2570_v50  ;;  %549 = vst.msk [vmem:[#allocation3 + $0x70] sm:$0xff] %vm472_vm1, %v2595_v56  ;;  %s1701_s28 = scalar_lea.sflag [#allocation5], %s3076_s27 }
  0x54   : > { %2032 = vmatprep.subr.bf16.mxu0 %v2031_v45  ;;  %v1231_v54 = vld [vmem:[#allocation2 + $0x32] sm:$0xff]  ;;  %v1232_v55 = vld [vmem:[#allocation2 + $0x3a] sm:$0xff]  ;;  %v1136_v58 = vld [vmem:[#allocation2 + $0x49] sm:$0xff] }
  0x55   : > { %874 = vrot.lane.b32.xlu0 %v842_v35, %s2259_s10  ;;  %2034 = vmatpush3.bf16.msra.mxu0 %v2031_v45  ;;  %v2601_v57 = vld [vmem:[#allocation2 + $0xb0] sm:$0xff]  ;;  %v1138_v62 = vld [vmem:[#allocation2 + $0x61] sm:$0xff]  ;;  %v2649_v5 = vld [vmem:[#allocation2 + $0x79] sm:$0xff] }
  0x56   : > { %876 = vrot.lane.b32.xlu1 %v843_v38, %s2259_s10  ;;  %2036 = vmatprep.subr.bf16.mxu0 %v2035_v49  ;;  %v1137_v59 = vld [vmem:[#allocation2 + $0x51] sm:$0xff]  ;;  %550 = vst.msk [vmem:[#allocation3 + $0x78] sm:$0xff] %vm472_vm1, %v2601_v57  ;;  %v1139_v63 = vld [vmem:[#allocation2 + $0x69] sm:$0xff]  ;;  %v2651_v6 = vld [vmem:[#allocation2 + $0x81] sm:$0xff] }
  0x57   : > { %v1233_v60 = vld [vmem:[#allocation2 + $0x4a] sm:$0xff]  ;;  %v1234_v61 = vld [vmem:[#allocation2 + $0x52] sm:$0xff]  ;;  %v1235_v1 = vld [vmem:[#allocation2 + $0x62] sm:$0xff] }
  0x58   : > { %v1236_v2 = vld [vmem:[#allocation2 + $0x6a] sm:$0xff]  ;;  %v2659_v9 = vld [vmem:[#allocation2 + $0x7a] sm:$0xff]  ;;  %v2666_v12 = vld [vmem:[#allocation2 + $0x82] sm:$0xff] }
  0x59   : > { %971 = vrot.lane.b32.xlu0 %v939_v41, %s2260_s17  ;;  %2038 = vmatpush3.bf16.msra.mxu0 %v2035_v49  ;;  %v2701_v25 = vld [vmem:[#allocation2 + $0x91] sm:$0xff]  ;;  %v2703_v26 = vld [vmem:[#allocation2 + $0x99] sm:$0xff]  ;;  %v2759_v47 = vld [vmem:[#allocation2 + $0xa9] sm:$0xff] }
  0x5a   : > { %973 = vrot.lane.b32.xlu1 %v940_v42, %s2260_s17  ;;  %1970 = vmatprep.subr.msk.mxu0 %vm1405_vm2, %v1348_v53  ;;  %vm2937_vm13 = vmpackc.low %vm1577_vm12, %vm1577_vm12 }
  0x5d   : > { %1069 = vrot.lane.b32.xlu0 %v2510_v29, %s2261_s12  ;;  %1971 = vmatpush3.msk.msra.mxu0 %vm1405_vm2, %v1348_v53 }
  0x5e   : > { %1071 = vrot.lane.b32.xlu1 %v2512_v30, %s2261_s12 }
  0x61   : > { %1166 = vrot.lane.b32.xlu0 %v1134_v51, %s2262_s21 }
  0x62   : > { %1168 = vrot.lane.b32.xlu1 %v1135_v52, %s2262_s21 }
  0x65   : > { %1263 = vrot.lane.b32.xlu0 %v1231_v54, %s2263_s18 }
  0x66   : > { %587 = vrot.lane.b32.xlu1 %v842_v35, %s2256_s0 }
  0x69   : > { %1265 = vrot.lane.b32.xlu0 %v1232_v55, %s2263_s18 }
  0x6a   : > { %589 = vrot.lane.b32.xlu1 %v843_v38, %s2256_s0 }
  0x6d   : > { %684 = vrot.lane.b32.xlu0 %v939_v41, %s2257_s29 }
  0x6e   : > { %686 = vrot.lane.b32.xlu1 %v940_v42, %s2257_s29 }
  0x71   : > { %781 = vrot.lane.b32.xlu0 %v2510_v29, %s2258_s30 }
  0x72   : > { %783 = vrot.lane.b32.xlu1 %v2512_v30, %s2258_s30  ;;  %v2712_v30 = vld [vmem:[#allocation2 + $0x92] sm:$0xff] }
  0x75   : > { %878 = vrot.lane.b32.xlu0 %v1134_v51, %s2259_s10 }
  0x76   : > { %880 = vrot.lane.b32.xlu1 %v1135_v52, %s2259_s10 }
  0x79   : > { %975 = vrot.lane.b32.xlu0 %v1231_v54, %s2260_s17 }
  0x7a   : > { %977 = vrot.lane.b32.xlu1 %v1232_v55, %s2260_s17 }
  0x7d   : > { %1073 = vrot.lane.b32.xlu0 %v2520_v31, %s2261_s12 }
  0x7e   : > { %1075 = vrot.lane.b32.xlu1 %v2522_v32, %s2261_s12 }
  0x81   : > { %1170 = vrot.lane.b32.xlu0 %v1136_v58, %s2262_s21 }
  0x82   : > { %1172 = vrot.lane.b32.xlu1 %v1137_v59, %s2262_s21 }
  0x85   : > { %1267 = vrot.lane.b32.xlu0 %v1233_v60, %s2263_s18 }
  0x86   : > { %591 = vrot.lane.b32.xlu1 %v1134_v51, %s2256_s0 }
  0x89   : > { %1269 = vrot.lane.b32.xlu0 %v1234_v61, %s2263_s18 }
  0x8a   : > { %593 = vrot.lane.b32.xlu1 %v1135_v52, %s2256_s0  ;;  %v2770_v52 = vld [vmem:[#allocation2 + $0xaa] sm:$0xff] }
  0x8d   : > { %688 = vrot.lane.b32.xlu0 %v1231_v54, %s2257_s29 }
  0x8e   : > { %690 = vrot.lane.b32.xlu1 %v1232_v55, %s2257_s29 }
  0x91   : > { %785 = vrot.lane.b32.xlu0 %v2520_v31, %s2258_s30 }
  0x92   : > { %787 = vrot.lane.b32.xlu1 %v2522_v32, %s2258_s30 }
  0x95   : > { %882 = vrot.lane.b32.xlu0 %v1136_v58, %s2259_s10 }
  0x96   : > { %884 = vrot.lane.b32.xlu1 %v1137_v59, %s2259_s10 }
  0x99   : > { %979 = vrot.lane.b32.xlu0 %v1233_v60, %s2260_s17 }
  0x9a   : > { %981 = vrot.lane.b32.xlu1 %v1234_v61, %s2260_s17 }
  0x9d   : > { %1077 = vrot.lane.b32.xlu0 %v2528_v33, %s2261_s12 }
  0x9e   : > { %1079 = vrot.lane.b32.xlu1 %v2530_v34, %s2261_s12 }
  0xa1   : > { %1174 = vrot.lane.b32.xlu0 %v1138_v62, %s2262_s21 }
  0xa2   : > { %1176 = vrot.lane.b32.xlu1 %v1139_v63, %s2262_s21 }
  0xa5   : > { %1271 = vrot.lane.b32.xlu0 %v1235_v1, %s2263_s18 }
  0xa6   : > { %595 = vrot.lane.b32.xlu1 %v1136_v58, %s2256_s0  ;;  %v2779_v58 = vld [vmem:[#allocation2 + $0xb2] sm:$0xff] }
  0xa9   : > { %1273 = vrot.lane.b32.xlu0 %v1236_v2, %s2263_s18 }
  0xaa   : > { %597 = vrot.lane.b32.xlu1 %v1137_v59, %s2256_s0 }
  0xad   : > { %692 = vrot.lane.b32.xlu0 %v1233_v60, %s2257_s29 }
  0xae   : > { %694 = vrot.lane.b32.xlu1 %v1234_v61, %s2257_s29 }
  0xb1   : > { %789 = vrot.lane.b32.xlu0 %v2528_v33, %s2258_s30 }
  0xb2   : > { %791 = vrot.lane.b32.xlu1 %v2530_v34, %s2258_s30  ;;  %v2721_v34 = vld [vmem:[#allocation2 + $0x9a] sm:$0xff] }
  0xb5   : > { %886 = vrot.lane.b32.xlu0 %v1138_v62, %s2259_s10 }
  0xb6   : > { %888 = vrot.lane.b32.xlu1 %v1139_v63, %s2259_s10 }
  0xb9   : > { %983 = vrot.lane.b32.xlu0 %v1235_v1, %s2260_s17 }
  0xba   : > { %985 = vrot.lane.b32.xlu1 %v1236_v2, %s2260_s17 }
  0xbb   : > { %v584_v3 = vpop.permute.xlu0 %583 }
  0xbc   : > { %v681_v4 = vpop.permute.xlu1 %680  ;;  %632 = vst.msk [vmem:[#allocation3] sm:$0xff] %vm631_vm3, %v584_v3 }
  0xbd   : > { %729 = vst.msk [vmem:[#allocation3] sm:$0xff] %vm728_vm4, %v681_v4  ;;  %1081 = vrot.lane.b32.xlu0 %v2538_v37, %s2261_s12 }
  0xbe   : > { %1083 = vrot.lane.b32.xlu1 %v2541_v39, %s2261_s12 }
  0xbf   : > { %v586_v7 = vpop.permute.xlu0 %585 }
  0xc0   : > { %v683_v8 = vpop.permute.xlu1 %682  ;;  %633 = vst.msk [vmem:[#allocation3 + $0x8] sm:$0xff] %vm631_vm3, %v586_v7 }
  0xc1   : > { %730 = vst.msk [vmem:[#allocation3 + $0x8] sm:$0xff] %vm728_vm4, %v683_v8  ;;  %1178 = vrot.lane.b32.xlu0 %v2649_v5, %s2262_s21  ;;  %v1146_v8 = vld [vmem:[#allocation2 + $0xc1] sm:$0xff] }
  0xc2   : > { %1180 = vrot.lane.b32.xlu1 %v2651_v6, %s2262_s21 }
  0xc3   : > { %v778_v10 = vpop.permute.xlu0 %777 }
  0xc4   : > { %v780_v11 = vpop.permute.xlu1 %779  ;;  %826 = vst.msk [vmem:[#allocation3] sm:$0xff] %vm825_vm5, %v778_v10 }
  0xc5   : > { %827 = vst.msk [vmem:[#allocation3 + $0x8] sm:$0xff] %vm825_vm5, %v780_v11  ;;  %1275 = vrot.lane.b32.xlu0 %v2659_v9, %s2263_s18 }
  0xc6   : > { %599 = vrot.lane.b32.xlu1 %v1138_v62, %s2256_s0 }
  0xc7   : > { %v875_v13 = vpop.permute.xlu0 %874 }
  0xc8   : > { %v877_v14 = vpop.permute.xlu1 %876  ;;  %923 = vst.msk [vmem:[#allocation3] sm:$0xff] %vm922_vm6, %v875_v13  ;;  %v1243_v13 = vld [vmem:[#allocation2 + $0xc2] sm:$0xff] }
  0xc9   : > { %924 = vst.msk [vmem:[#allocation3 + $0x8] sm:$0xff] %vm922_vm6, %v877_v14  ;;  %1277 = vrot.lane.b32.xlu0 %v2666_v12, %s2263_s18 }
  0xca   : > { %601 = vrot.lane.b32.xlu1 %v1139_v63, %s2256_s0 }
  0xcb   : > { %v972_v15 = vpop.permute.xlu0 %971 }
  0xcc   : > { %v974_v16 = vpop.permute.xlu1 %973  ;;  %1020 = vst.msk [vmem:[#allocation3] sm:$0xff] %vm1019_vm7, %v972_v15 }
  0xcd   : > { %1021 = vst.msk [vmem:[#allocation3 + $0x8] sm:$0xff] %vm1019_vm7, %v974_v16  ;;  %696 = vrot.lane.b32.xlu0 %v1235_v1, %s2257_s29 }
  0xce   : > { %698 = vrot.lane.b32.xlu1 %v1236_v2, %s2257_s29 }
  0xcf   : > { %v1070_v17 = vpop.permute.xlu0 %1069 }
  0xd0   : > { %v1072_v18 = vpop.permute.xlu1 %1071  ;;  %1118 = vst.msk [vmem:[#allocation3] sm:$0xff] %vm1117_vm8, %v1070_v17  ;;  %v1244_v17 = vld [vmem:[#allocation2 + $0xca] sm:$0xff] }
  0xd1   : > { %1119 = vst.msk [vmem:[#allocation3 + $0x8] sm:$0xff] %vm1117_vm8, %v1072_v18  ;;  %793 = vrot.lane.b32.xlu0 %v2538_v37, %s2258_s30 }
  0xd2   : > { %795 = vrot.lane.b32.xlu1 %v2541_v39, %s2258_s30 }
  0xd3   : > { %v1167_v19 = vpop.permute.xlu0 %1166 }
  0xd4   : > { %v1169_v20 = vpop.permute.xlu1 %1168  ;;  %1215 = vst.msk [vmem:[#allocation3] sm:$0xff] %vm1214_vm9, %v1167_v19 }
  0xd5   : > { %1216 = vst.msk [vmem:[#allocation3 + $0x8] sm:$0xff] %vm1214_vm9, %v1169_v20  ;;  %890 = vrot.lane.b32.xlu0 %v2649_v5, %s2259_s10 }
  0xd6   : > { %892 = vrot.lane.b32.xlu1 %v2651_v6, %s2259_s10 }
  0xd7   : > { %v1264_v21 = vpop.permute.xlu0 %1263 }
  0xd8   : > { %v588_v22 = vpop.permute.xlu1 %587  ;;  %1312 = vst.msk [vmem:[#allocation3] sm:$0xff] %vm1311_vm10, %v1264_v21 }
  0xd9   : > { %634 = vst.msk [vmem:[#allocation3 + $0x10] sm:$0xff] %vm631_vm3, %v588_v22  ;;  %987 = vrot.lane.b32.xlu0 %v2659_v9, %s2260_s17 }
  0xda   : > { %989 = vrot.lane.b32.xlu1 %v2666_v12, %s2260_s17 }
  0xdb   : > { %v1266_v23 = vpop.permute.xlu0 %1265 }
  0xdc   : > { %v590_v24 = vpop.permute.xlu1 %589  ;;  %1313 = vst.msk [vmem:[#allocation3 + $0x8] sm:$0xff] %vm1311_vm10, %v1266_v23 }
  0xdd   : > { %635 = vst.msk [vmem:[#allocation3 + $0x18] sm:$0xff] %vm631_vm3, %v590_v24  ;;  %1085 = vrot.lane.b32.xlu0 %v2564_v48, %s2261_s12 }
  0xde   : > { %1087 = vrot.lane.b32.xlu1 %v2570_v50, %s2261_s12 }
  0xdf   : > { %v685_v27 = vpop.permute.xlu0 %684  ;;  %v1328_v29 = vld [vmem:[#allocation3] sm:$0xff] }
  0xe0   : > { %v687_v28 = vpop.permute.xlu1 %686  ;;  %731 = vst.msk [vmem:[#allocation3 + $0x10] sm:$0xff] %vm728_vm4, %v685_v27  ;;  %1972 = vmatprep.mubr.msk.f32.mxu0 %vm1356_vm11, %v1328_v29  ;;  %v1052_v29 = vld [vmem:[#allocation2 + $0xe0] sm:$0xff] }
  0xe1   : > { %732 = vst.msk [vmem:[#allocation3 + $0x18] sm:$0xff] %vm728_vm4, %v687_v28  ;;  %1182 = vrot.lane.b32.xlu0 %v2701_v25, %s2262_s21  ;;  %v1051_v28 = vld [vmem:[#allocation2 + $0xd8] sm:$0xff] }
  0xe2   : > { %1184 = vrot.lane.b32.xlu1 %v2703_v26, %s2262_s21 }
  0xe3   : > { %v782_v31 = vpop.permute.xlu0 %781  ;;  %v1329_v33 = vld [vmem:[#allocation3 + $0x8] sm:$0xff] }
  0xe4   : > { %v784_v32 = vpop.permute.xlu1 %783  ;;  %828 = vst.msk [vmem:[#allocation3 + $0x10] sm:$0xff] %vm825_vm5, %v782_v31  ;;  %1973 = vmatmul.mubr.msk.f32.vlgmr.msra.gmra.mrb[0].mxu0 %vm1356_vm11, %v1329_v33  ;;  %v1149_v33 = vld [vmem:[#allocation2 + $0xe1] sm:$0xff] }
  0xe5   : > { %829 = vst.msk [vmem:[#allocation3 + $0x18] sm:$0xff] %vm825_vm5, %v784_v32  ;;  %1279 = vrot.lane.b32.xlu0 %v2712_v30, %s2263_s18  ;;  %v1148_v32 = vld [vmem:[#allocation2 + $0xd9] sm:$0xff] }
  0xe6   : > { %603 = vrot.lane.b32.xlu1 %v2649_v5, %s2256_s0 }
  0xe7   : > { %v879_v35 = vpop.permute.xlu0 %878 }
  0xe8   : > { %v881_v36 = vpop.permute.xlu1 %880  ;;  %925 = vst.msk [vmem:[#allocation3 + $0x10] sm:$0xff] %vm922_vm6, %v879_v35 }
  0xe9   : > { %926 = vst.msk [vmem:[#allocation3 + $0x18] sm:$0xff] %vm922_vm6, %v881_v36  ;;  %1281 = vrot.lane.b32.xlu0 %v2721_v34, %s2263_s18 }
  0xea   : > { %605 = vrot.lane.b32.xlu1 %v2651_v6, %s2256_s0 }
  0xeb   : > { %v976_v37 = vpop.permute.xlu0 %975 }
  0xec   : > { %v978_v38 = vpop.permute.xlu1 %977  ;;  %1022 = vst.msk [vmem:[#allocation3 + $0x10] sm:$0xff] %vm1019_vm7, %v976_v37 }
  0xed   : > { %1023 = vst.msk [vmem:[#allocation3 + $0x18] sm:$0xff] %vm1019_vm7, %v978_v38  ;;  %700 = vrot.lane.b32.xlu0 %v2659_v9, %s2257_s29  ;;  %v1147_v9 = vld [vmem:[#allocation2 + $0xc9] sm:$0xff]  ;;  %v1245_v38 = vld [vmem:[#allocation2 + $0xda] sm:$0xff] }
  0xee   : > { %702 = vrot.lane.b32.xlu1 %v2666_v12, %s2257_s29 }
  0xef   : > { %v1074_v39 = vpop.permute.xlu0 %1073 }
  0xf0   : > { %v1076_v40 = vpop.permute.xlu1 %1075  ;;  %1120 = vst.msk [vmem:[#allocation3 + $0x10] sm:$0xff] %vm1117_vm8, %v1074_v39  ;;  %v1246_v39 = vld [vmem:[#allocation2 + $0xe2] sm:$0xff] }
  0xf1   : > { %1121 = vst.msk [vmem:[#allocation3 + $0x18] sm:$0xff] %vm1117_vm8, %v1076_v40  ;;  %797 = vrot.lane.b32.xlu0 %v2564_v48, %s2258_s30  ;;  %v2761_v48 = vld [vmem:[#allocation2 + $0xb1] sm:$0xff] }
  0xf2   : > { %799 = vrot.lane.b32.xlu1 %v2570_v50, %s2258_s30 }
  0xf3   : > { %v1171_v41 = vpop.permute.xlu0 %1170 }
  0xf4   : > { %v1173_v42 = vpop.permute.xlu1 %1172  ;;  %1217 = vst.msk [vmem:[#allocation3 + $0x10] sm:$0xff] %vm1214_vm9, %v1171_v41 }
  0xf5   : > { %1218 = vst.msk [vmem:[#allocation3 + $0x18] sm:$0xff] %vm1214_vm9, %v1173_v42  ;;  %894 = vrot.lane.b32.xlu0 %v2701_v25, %s2259_s10 }
  0xf6   : > { %896 = vrot.lane.b32.xlu1 %v2703_v26, %s2259_s10 }
  0xf7   : > { %v1268_v43 = vpop.permute.xlu0 %1267 }
  0xf8   : > { %v592_v44 = vpop.permute.xlu1 %591  ;;  %1314 = vst.msk [vmem:[#allocation3 + $0x10] sm:$0xff] %vm1311_vm10, %v1268_v43 }
  0xf9   : > { %636 = vst.msk [vmem:[#allocation3 + $0x20] sm:$0xff] %vm631_vm3, %v592_v44  ;;  %991 = vrot.lane.b32.xlu0 %v2712_v30, %s2260_s17 }
  0xfa   : > { %993 = vrot.lane.b32.xlu1 %v2721_v34, %s2260_s17 }
  0xfb   : > { %v1270_v45 = vpop.permute.xlu0 %1269 }
  0xfc   : > { %v594_v46 = vpop.permute.xlu1 %593  ;;  %1315 = vst.msk [vmem:[#allocation3 + $0x18] sm:$0xff] %vm1311_vm10, %v1270_v45 }
  0xfd   : > { %637 = vst.msk [vmem:[#allocation3 + $0x28] sm:$0xff] %vm631_vm3, %v594_v46  ;;  %1089 = vrot.lane.b32.xlu0 %v2595_v56, %s2261_s12 }
  0xfe   : > { %1091 = vrot.lane.b32.xlu1 %v2601_v57, %s2261_s12 }
  0xff   : > { %v689_v49 = vpop.permute.xlu0 %688  ;;  %v1330_v51 = vld [vmem:[#allocation3 + $0x10] sm:$0xff] }
 0x100   : > { %v691_v50 = vpop.permute.xlu1 %690  ;;  %733 = vst.msk [vmem:[#allocation3 + $0x20] sm:$0xff] %vm728_vm4, %v689_v49  ;;  %1975 = vmatprep.mubr.msk.f32.mxu0 %vm1356_vm11, %v1330_v51 }
 0x101   : > { %734 = vst.msk [vmem:[#allocation3 + $0x28] sm:$0xff] %vm728_vm4, %v691_v50  ;;  %1186 = vrot.lane.b32.xlu0 %v2759_v47, %s2262_s21 }
 0x102   : > { %1188 = vrot.lane.b32.xlu1 %v2761_v48, %s2262_s21 }
 0x103   : > { %v786_v53 = vpop.permute.xlu0 %785  ;;  %v1331_v55 = vld [vmem:[#allocation3 + $0x18] sm:$0xff] }
 0x104   : > { %v788_v54 = vpop.permute.xlu1 %787  ;;  %830 = vst.msk [vmem:[#allocation3 + $0x20] sm:$0xff] %vm825_vm5, %v786_v53  ;;  %1976 = vmatmul.mubr.msk.f32.gmra.mrb[2].mxu0 %vm1356_vm11, %v1331_v55 }
 0x105   : > { %831 = vst.msk [vmem:[#allocation3 + $0x28] sm:$0xff] %vm825_vm5, %v788_v54  ;;  %1283 = vrot.lane.b32.xlu0 %v2770_v52, %s2263_s18 }
 0x106   : > { %607 = vrot.lane.b32.xlu1 %v2701_v25, %s2256_s0 }
 0x107   : > { %v883_v59 = vpop.permute.xlu0 %882 }
 0x108   : > { %v885_v60 = vpop.permute.xlu1 %884  ;;  %927 = vst.msk [vmem:[#allocation3 + $0x20] sm:$0xff] %vm922_vm6, %v883_v59 }
 0x109   : > { %928 = vst.msk [vmem:[#allocation3 + $0x28] sm:$0xff] %vm922_vm6, %v885_v60  ;;  %1285 = vrot.lane.b32.xlu0 %v2779_v58, %s2263_s18 }
 0x10a   : > { %609 = vrot.lane.b32.xlu1 %v2703_v26, %s2256_s0 }
 0x10b   : > { %v980_v61 = vpop.permute.xlu0 %979 }
 0x10c   : > { %v982_v62 = vpop.permute.xlu1 %981  ;;  %1024 = vst.msk [vmem:[#allocation3 + $0x20] sm:$0xff] %vm1019_vm7, %v980_v61 }
 0x10d   : > { %1025 = vst.msk [vmem:[#allocation3 + $0x28] sm:$0xff] %vm1019_vm7, %v982_v62  ;;  %704 = vrot.lane.b32.xlu0 %v2712_v30, %s2257_s29 }
 0x10e   : > { %706 = vrot.lane.b32.xlu1 %v2721_v34, %s2257_s29  ;;  %v2264_v34 = vmov 0.0|0.0  }
 0x10f   : > { %v1078_v63 = vpop.permute.xlu0 %1077  ;;  %2039 = vmatprep.subr.bf16.mxu1 %v2264_v34 }
 0x110   : > { %v1080_v1 = vpop.permute.xlu1 %1079  ;;  %1122 = vst.msk [vmem:[#allocation3 + $0x20] sm:$0xff] %vm1117_vm8, %v1078_v63 }
 0x111   : > { %1123 = vst.msk [vmem:[#allocation3 + $0x28] sm:$0xff] %vm1117_vm8, %v1080_v1  ;;  %801 = vrot.lane.b32.xlu0 %v2595_v56, %s2258_s30  ;;  %v1049_v56 = vld [vmem:[#allocation2 + $0xc0] sm:$0xff] }
 0x112   : > { %803 = vrot.lane.b32.xlu1 %v2601_v57, %s2258_s30  ;;  %v1050_v57 = vld [vmem:[#allocation2 + $0xc8] sm:$0xff] }
 0x113   : > { %v1175_v2 = vpop.permute.xlu0 %1174 }
 0x114   : > { %v1177_v3 = vpop.permute.xlu1 %1176  ;;  %1219 = vst.msk [vmem:[#allocation3 + $0x20] sm:$0xff] %vm1214_vm9, %v1175_v2 }
 0x115   : > { %1220 = vst.msk [vmem:[#allocation3 + $0x28] sm:$0xff] %vm1214_vm9, %v1177_v3  ;;  %898 = vrot.lane.b32.xlu0 %v2759_v47, %s2259_s10 }
 0x116   : > { %900 = vrot.lane.b32.xlu1 %v2761_v48, %s2259_s10 }
 0x117   : > { %v1272_v4 = vpop.permute.xlu0 %1271 }
 0x118   : > { %v596_v5 = vpop.permute.xlu1 %595  ;;  %1316 = vst.msk [vmem:[#allocation3 + $0x20] sm:$0xff] %vm1311_vm10, %v1272_v4 }
 0x119   : > { %638 = vst.msk [vmem:[#allocation3 + $0x30] sm:$0xff] %vm631_vm3, %v596_v5  ;;  %995 = vrot.lane.b32.xlu0 %v2770_v52, %s2260_s17 }
 0x11a   : > { %997 = vrot.lane.b32.xlu1 %v2779_v58, %s2260_s17 }
 0x11b   : > { %v1274_v6 = vpop.permute.xlu0 %1273 }
 0x11c   : > { %v598_v7 = vpop.permute.xlu1 %597  ;;  %1317 = vst.msk [vmem:[#allocation3 + $0x28] sm:$0xff] %vm1311_vm10, %v1274_v6 }
 0x11d   : > { %639 = vst.msk [vmem:[#allocation3 + $0x38] sm:$0xff] %vm631_vm3, %v598_v7  ;;  %1093 = vrot.lane.b32.xlu0 %v1049_v56, %s2261_s12 }
 0x11e   : > { %1095 = vrot.lane.b32.xlu1 %v1050_v57, %s2261_s12 }
 0x11f   : > { %v693_v10 = vpop.permute.xlu0 %692  ;;  %v1332_v12 = vld [vmem:[#allocation3 + $0x20] sm:$0xff] }
 0x120   : > { %v695_v11 = vpop.permute.xlu1 %694  ;;  %735 = vst.msk [vmem:[#allocation3 + $0x30] sm:$0xff] %vm728_vm4, %v693_v10  ;;  %1978 = vmatprep.mubr.msk.f32.mxu0 %vm1356_vm11, %v1332_v12 }
 0x121   : > { %736 = vst.msk [vmem:[#allocation3 + $0x38] sm:$0xff] %vm728_vm4, %v695_v11  ;;  %1190 = vrot.lane.b32.xlu0 %v1146_v8, %s2262_s21 }
 0x122   : > { %1192 = vrot.lane.b32.xlu1 %v1147_v9, %s2262_s21 }
 0x123   : > { %v790_v14 = vpop.permute.xlu0 %789  ;;  %v1333_v16 = vld [vmem:[#allocation3 + $0x28] sm:$0xff] }
 0x124   : > { %v792_v15 = vpop.permute.xlu1 %791  ;;  %832 = vst.msk [vmem:[#allocation3 + $0x30] sm:$0xff] %vm825_vm5, %v790_v14  ;;  %1979 = vmatmul.mubr.msk.f32.gmra.mrb[4].mxu0 %vm1356_vm11, %v1333_v16 }
 0x125   : > { %833 = vst.msk [vmem:[#allocation3 + $0x38] sm:$0xff] %vm825_vm5, %v792_v15  ;;  %1287 = vrot.lane.b32.xlu0 %v1243_v13, %s2263_s18 }
 0x126   : > { %611 = vrot.lane.b32.xlu1 %v2759_v47, %s2256_s0 }
 0x127   : > { %v887_v18 = vpop.permute.xlu0 %886 }
 0x128   : > { %v889_v19 = vpop.permute.xlu1 %888  ;;  %929 = vst.msk [vmem:[#allocation3 + $0x30] sm:$0xff] %vm922_vm6, %v887_v18 }
 0x129   : > { %930 = vst.msk [vmem:[#allocation3 + $0x38] sm:$0xff] %vm922_vm6, %v889_v19  ;;  %1289 = vrot.lane.b32.xlu0 %v1244_v17, %s2263_s18 }
 0x12a   : > { %613 = vrot.lane.b32.xlu1 %v2761_v48, %s2256_s0 }
 0x12b   : > { %v984_v20 = vpop.permute.xlu0 %983 }
 0x12c   : > { %v986_v21 = vpop.permute.xlu1 %985  ;;  %1026 = vst.msk [vmem:[#allocation3 + $0x30] sm:$0xff] %vm1019_vm7, %v984_v20 }
 0x12d   : > { %1027 = vst.msk [vmem:[#allocation3 + $0x38] sm:$0xff] %vm1019_vm7, %v986_v21  ;;  %708 = vrot.lane.b32.xlu0 %v2770_v52, %s2257_s29 }
 0x12e   : > { %710 = vrot.lane.b32.xlu1 %v2779_v58, %s2257_s29  ;;  %s2267_s29 = smov [#allocation4]  }
 0x12f   : > { %v1082_v22 = vpop.permute.xlu0 %1081 }
 0x130   : > { %v1084_v23 = vpop.permute.xlu1 %1083  ;;  %1124 = vst.msk [vmem:[#allocation3 + $0x30] sm:$0xff] %vm1117_vm8, %v1082_v22 }
 0x131   : > { %1125 = vst.msk [vmem:[#allocation3 + $0x38] sm:$0xff] %vm1117_vm8, %v1084_v23  ;;  %805 = vrot.lane.b32.xlu0 %v1049_v56, %s2258_s30 }
 0x132   : > { %807 = vrot.lane.b32.xlu1 %v1050_v57, %s2258_s30  ;;  %s2161_s30 = sshll.u32 %s2267_s29, 4  ;;  %s2162_s30 = int_to_ptr.vmem [resolvable:$false] %s2161_s30 }
 0x133   : > { %v1179_v24 = vpop.permute.xlu0 %1178 }
 0x134   : > { %v1181_v25 = vpop.permute.xlu1 %1180  ;;  %1221 = vst.msk [vmem:[#allocation3 + $0x30] sm:$0xff] %vm1214_vm9, %v1179_v24 }
 0x135   : > { %1222 = vst.msk [vmem:[#allocation3 + $0x38] sm:$0xff] %vm1214_vm9, %v1181_v25  ;;  %902 = vrot.lane.b32.xlu0 %v1146_v8, %s2259_s10 }
 0x136   : > { %904 = vrot.lane.b32.xlu1 %v1147_v9, %s2259_s10  ;;  %s2163_s10 = scalar_lea.vmem %s2162_s30, 256 }
 0x137   : > { %v1276_v26 = vpop.permute.xlu0 %1275 }
 0x138   : > { %v600_v27 = vpop.permute.xlu1 %599  ;;  %1318 = vst.msk [vmem:[#allocation3 + $0x30] sm:$0xff] %vm1311_vm10, %v1276_v26 }
 0x139   : > { %640 = vst.msk [vmem:[#allocation3 + $0x40] sm:$0xff] %vm631_vm3, %v600_v27  ;;  %999 = vrot.lane.b32.xlu0 %v1243_v13, %s2260_s17 }
 0x13a   : > { %1001 = vrot.lane.b32.xlu1 %v1244_v17, %s2260_s17 }
 0x13b   : > { %v1278_v30 = vpop.permute.xlu0 %1277 }
 0x13c   : > { %v602_v31 = vpop.permute.xlu1 %601  ;;  %1319 = vst.msk [vmem:[#allocation3 + $0x38] sm:$0xff] %vm1311_vm10, %v1278_v30 }
 0x13d   : > { %641 = vst.msk [vmem:[#allocation3 + $0x48] sm:$0xff] %vm631_vm3, %v602_v31  ;;  %1097 = vrot.lane.b32.xlu0 %v1051_v28, %s2261_s12 }
 0x13e   : > { %1099 = vrot.lane.b32.xlu1 %v1052_v29, %s2261_s12  ;;  %s1913_s12 = sshll.u32 %s1712_s20, 7 }
 0x13f   : > { %v697_v35 = vpop.permute.xlu0 %696  ;;  %v1334_v37 = vld [vmem:[#allocation3 + $0x30] sm:$0xff] }
 0x140   : > { %v699_v36 = vpop.permute.xlu1 %698  ;;  %737 = vst.msk [vmem:[#allocation3 + $0x40] sm:$0xff] %vm728_vm4, %v697_v35  ;;  %1981 = vmatprep.mubr.msk.f32.mxu0 %vm1356_vm11, %v1334_v37 }
 0x141   : > { %738 = vst.msk [vmem:[#allocation3 + $0x48] sm:$0xff] %vm728_vm4, %v699_v36  ;;  %1194 = vrot.lane.b32.xlu0 %v1148_v32, %s2262_s21 }
 0x142   : > { %1196 = vrot.lane.b32.xlu1 %v1149_v33, %s2262_s21  ;;  %s1716_s21 = sshll.u32 %s388_s11, 4  ;;  %s2997_s21 = int_to_ptr.vmem [resolvable:$true] %s1716_s21 }
 0x143   : > { %v794_v40 = vpop.permute.xlu0 %793  ;;  %v1335_v42 = vld [vmem:[#allocation3 + $0x38] sm:$0xff]  ;;  %s2157_s0 = scalar_lea.vmem %s2997_s21, 128  ;;  %p2164_p12 = scmp.lt.s32.totalorder %s2997_s21, %s2162_s30 }
 0x144   : > { %v796_v41 = vpop.permute.xlu1 %795  ;;  %834 = vst.msk [vmem:[#allocation3 + $0x40] sm:$0xff] %vm825_vm5, %v794_v40  ;;  %1982 = vmatmul.mubr.msk.f32.gmra.mrb[6].mxu0 %vm1356_vm11, %v1335_v42  ;;  %p2158_p9 = scmp.ne.s32.totalorder %s2997_s21, %s2157_s0  ;;  %p2165_p13 = scmp.lt.s32.totalorder %s2163_s10, %s2157_s0 }
 0x145   : > { %835 = vst.msk [vmem:[#allocation3 + $0x48] sm:$0xff] %vm825_vm5, %v796_v41  ;;  %1291 = vrot.lane.b32.xlu0 %v1245_v38, %s2263_s18 }
 0x146   : > { %1293 = vrot.lane.b32.xlu1 %v1246_v39, %s2263_s18  ;;  %s2995_s18 = scalar_lea.hbm %s3059_s7, %s1913_s12  ;;  %p2159_p10 = pnand %p2158_p9, %p2359_p3 }
 0x147   : > { %v891_v43 = vpop.permute.xlu0 %890  ;;  %p2166_p0 = por %p2165_p13, %p2164_p12 }
 0x148   : > { %v893_v44 = vpop.permute.xlu1 %892  ;;  %931 = vst.msk [vmem:[#allocation3 + $0x40] sm:$0xff] %vm922_vm6, %v891_v43  ;;  %v2929_v43 = vld [vmem:[%s3056_s4] ss:$0 sm:$0xff]  ;;  %p2160_p11 = pneg %p2159_p10 }
 0x149   : > { %932 = vst.msk [vmem:[#allocation3 + $0x48] sm:$0xff] %vm922_vm6, %v893_v44 }
 0x14a   : > { %p2167_p1 = pnand %p2166_p0, %p2160_p11 }
 0x14b   : > { %v988_v45 = vpop.permute.xlu0 %987 }
 0x14c   : > { %v990_v46 = vpop.permute.xlu1 %989  ;;  %1028 = vst.msk [vmem:[#allocation3 + $0x40] sm:$0xff] %vm1019_vm7, %v988_v45 }
 0x14d   : > { %1029 = vst.msk [vmem:[#allocation3 + $0x48] sm:$0xff] %vm1019_vm7, %v990_v46 }
 0x14f   : > { %v1086_v47 = vpop.permute.xlu0 %1085 }
 0x150   : > { %v1088_v48 = vpop.permute.xlu1 %1087  ;;  %1126 = vst.msk [vmem:[#allocation3 + $0x40] sm:$0xff] %vm1117_vm8, %v1086_v47 }
 0x151   : > { %1127 = vst.msk [vmem:[#allocation3 + $0x48] sm:$0xff] %vm1117_vm8, %v1088_v48 }
 0x153   : > { %v1183_v49 = vpop.permute.xlu0 %1182 }
 0x154   : > { %v1185_v50 = vpop.permute.xlu1 %1184  ;;  %1223 = vst.msk [vmem:[#allocation3 + $0x40] sm:$0xff] %vm1214_vm9, %v1183_v49 }
 0x155   : > { %1224 = vst.msk [vmem:[#allocation3 + $0x48] sm:$0xff] %vm1214_vm9, %v1185_v50 }
 0x157   : > { %v1280_v51 = vpop.permute.xlu0 %1279 }
 0x158   : > { %v604_v52 = vpop.permute.xlu1 %603  ;;  %1320 = vst.msk [vmem:[#allocation3 + $0x40] sm:$0xff] %vm1311_vm10, %v1280_v51 }
 0x159   : > { %642 = vst.msk [vmem:[#allocation3 + $0x50] sm:$0xff] %vm631_vm3, %v604_v52 }
 0x15b   : > { %v1282_v53 = vpop.permute.xlu0 %1281 }
 0x15c   : > { %v606_v54 = vpop.permute.xlu1 %605  ;;  %1321 = vst.msk [vmem:[#allocation3 + $0x48] sm:$0xff] %vm1311_vm10, %v1282_v53 }
 0x15d   : > { %643 = vst.msk [vmem:[#allocation3 + $0x58] sm:$0xff] %vm631_vm3, %v606_v54 }
 0x15f   : > { %v701_v55 = vpop.permute.xlu0 %700  ;;  %v1336_v59 = vld [vmem:[#allocation3 + $0x40] sm:$0xff] }
 0x160   : > { %v703_v58 = vpop.permute.xlu1 %702  ;;  %739 = vst.msk [vmem:[#allocation3 + $0x50] sm:$0xff] %vm728_vm4, %v701_v55  ;;  %1984 = vmatprep.mubr.msk.f32.mxu0 %vm1356_vm11, %v1336_v59 }
 0x161   : > { %740 = vst.msk [vmem:[#allocation3 + $0x58] sm:$0xff] %vm728_vm4, %v703_v58 }
 0x163   : > { %v798_v60 = vpop.permute.xlu0 %797  ;;  %v1337_v62 = vld [vmem:[#allocation3 + $0x48] sm:$0xff] }
 0x164   : > { %v800_v61 = vpop.permute.xlu1 %799  ;;  %836 = vst.msk [vmem:[#allocation3 + $0x50] sm:$0xff] %vm825_vm5, %v798_v60  ;;  %1985 = vmatmul.mubr.msk.f32.gmra.mrb[8].mxu0 %vm1356_vm11, %v1337_v62 }
 0x165   : > { %837 = vst.msk [vmem:[#allocation3 + $0x58] sm:$0xff] %vm825_vm5, %v800_v61 }
 0x167   : > { %v895_v63 = vpop.permute.xlu0 %894 }
 0x168   : > { %v897_v1 = vpop.permute.xlu1 %896  ;;  %933 = vst.msk [vmem:[#allocation3 + $0x50] sm:$0xff] %vm922_vm6, %v895_v63 }
 0x169   : > { %934 = vst.msk [vmem:[#allocation3 + $0x58] sm:$0xff] %vm922_vm6, %v897_v1 }
 0x16b   : > { %v992_v2 = vpop.permute.xlu0 %991 }
 0x16c   : > { %v994_v3 = vpop.permute.xlu1 %993  ;;  %1030 = vst.msk [vmem:[#allocation3 + $0x50] sm:$0xff] %vm1019_vm7, %v992_v2 }
 0x16d   : > { %1031 = vst.msk [vmem:[#allocation3 + $0x58] sm:$0xff] %vm1019_vm7, %v994_v3 }
 0x16f   : > { %v1090_v4 = vpop.permute.xlu0 %1089 }
 0x170   : > { %v1092_v5 = vpop.permute.xlu1 %1091  ;;  %1128 = vst.msk [vmem:[#allocation3 + $0x50] sm:$0xff] %vm1117_vm8, %v1090_v4 }
 0x171   : > { %1129 = vst.msk [vmem:[#allocation3 + $0x58] sm:$0xff] %vm1117_vm8, %v1092_v5 }
 0x173   : > { %v1187_v56 = vpop.permute.xlu0 %1186 }
 0x174   : > { %v1189_v57 = vpop.permute.xlu1 %1188  ;;  %1225 = vst.msk [vmem:[#allocation3 + $0x50] sm:$0xff] %vm1214_vm9, %v1187_v56 }
 0x175   : > { %1226 = vst.msk [vmem:[#allocation3 + $0x58] sm:$0xff] %vm1214_vm9, %v1189_v57 }
 0x177   : > { %v1284_v6 = vpop.permute.xlu0 %1283 }
 0x178   : > { %v608_v7 = vpop.permute.xlu1 %607  ;;  %1322 = vst.msk [vmem:[#allocation3 + $0x50] sm:$0xff] %vm1311_vm10, %v1284_v6 }
 0x179   : > { %644 = vst.msk [vmem:[#allocation3 + $0x60] sm:$0xff] %vm631_vm3, %v608_v7 }
 0x17b   : > { %v1286_v8 = vpop.permute.xlu0 %1285 }
 0x17c   : > { %v610_v9 = vpop.permute.xlu1 %609  ;;  %1323 = vst.msk [vmem:[#allocation3 + $0x58] sm:$0xff] %vm1311_vm10, %v1286_v8 }
 0x17d   : > { %645 = vst.msk [vmem:[#allocation3 + $0x68] sm:$0xff] %vm631_vm3, %v610_v9 }
 0x17f   : > { %v705_v10 = vpop.permute.xlu0 %704  ;;  %v1338_v12 = vld [vmem:[#allocation3 + $0x50] sm:$0xff] }
 0x180   : > { %v707_v11 = vpop.permute.xlu1 %706  ;;  %741 = vst.msk [vmem:[#allocation3 + $0x60] sm:$0xff] %vm728_vm4, %v705_v10  ;;  %1987 = vmatprep.mubr.msk.f32.mxu0 %vm1356_vm11, %v1338_v12 }
 0x181   : > { %742 = vst.msk [vmem:[#allocation3 + $0x68] sm:$0xff] %vm728_vm4, %v707_v11 }
 0x183   : > { %v802_v13 = vpop.permute.xlu0 %801  ;;  %v1339_v15 = vld [vmem:[#allocation3 + $0x58] sm:$0xff] }
 0x184   : > { %v804_v14 = vpop.permute.xlu1 %803  ;;  %838 = vst.msk [vmem:[#allocation3 + $0x60] sm:$0xff] %vm825_vm5, %v802_v13  ;;  %1988 = vmatmul.mubr.msk.f32.gmra.mrb[10].mxu0 %vm1356_vm11, %v1339_v15  ;;  %v2266_v15 = vmov 0  }
 0x185   : > { %839 = vst.msk [vmem:[#allocation3 + $0x68] sm:$0xff] %vm825_vm5, %v804_v14  ;;  %v1571_v14 = vld [vmem:[%s3058_s6] sm:$0xff]  ;;  %2156 = vset.pattern.permute.xlu0 %v2266_v15 }
 0x186   : > { %1574 = vperm.xlu0 %2156, %v1571_v14  }
 0x187   : > { %v899_v16 = vpop.permute.xlu0 %898 }
 0x188   : > { %v901_v17 = vpop.permute.xlu1 %900  ;;  %935 = vst.msk [vmem:[#allocation3 + $0x60] sm:$0xff] %vm922_vm6, %v899_v16 }
 0x189   : > { %936 = vst.msk [vmem:[#allocation3 + $0x68] sm:$0xff] %vm922_vm6, %v901_v17 }
 0x18b   : > { %v996_v18 = vpop.permute.xlu0 %995 }
 0x18c   : > { %v998_v19 = vpop.permute.xlu1 %997  ;;  %1032 = vst.msk [vmem:[#allocation3 + $0x60] sm:$0xff] %vm1019_vm7, %v996_v18 }
 0x18d   : > { %1033 = vst.msk [vmem:[#allocation3 + $0x68] sm:$0xff] %vm1019_vm7, %v998_v19 }
 0x18f   : > { %v1094_v20 = vpop.permute.xlu0 %1093 }
 0x190   : > { %v1096_v21 = vpop.permute.xlu1 %1095  ;;  %1130 = vst.msk [vmem:[#allocation3 + $0x60] sm:$0xff] %vm1117_vm8, %v1094_v20 }
 0x191   : > { %1131 = vst.msk [vmem:[#allocation3 + $0x68] sm:$0xff] %vm1117_vm8, %v1096_v21 }
 0x193   : > { %v1191_v22 = vpop.permute.xlu0 %1190 }
 0x194   : > { %v1193_v23 = vpop.permute.xlu1 %1192  ;;  %1227 = vst.msk [vmem:[#allocation3 + $0x60] sm:$0xff] %vm1214_vm9, %v1191_v22 }
 0x195   : > { %1228 = vst.msk [vmem:[#allocation3 + $0x68] sm:$0xff] %vm1214_vm9, %v1193_v23 }
 0x197   : > { %v1288_v24 = vpop.permute.xlu0 %1287 }
 0x198   : > { %v612_v25 = vpop.permute.xlu1 %611  ;;  %1324 = vst.msk [vmem:[#allocation3 + $0x60] sm:$0xff] %vm1311_vm10, %v1288_v24 }
 0x199   : > { %646 = vst.msk [vmem:[#allocation3 + $0x70] sm:$0xff] %vm631_vm3, %v612_v25 }
 0x19b   : > { %v1290_v26 = vpop.permute.xlu0 %1289 }
 0x19c   : > { %v614_v27 = vpop.permute.xlu1 %613  ;;  %1325 = vst.msk [vmem:[#allocation3 + $0x68] sm:$0xff] %vm1311_vm10, %v1290_v26 }
 0x19d   : > { %647 = vst.msk [vmem:[#allocation3 + $0x78] sm:$0xff] %vm631_vm3, %v614_v27 }
 0x19f   : > { %v709_v28 = vpop.permute.xlu0 %708  ;;  %v1340_v30 = vld [vmem:[#allocation3 + $0x60] sm:$0xff] }
 0x1a0   : > { %v711_v29 = vpop.permute.xlu1 %710  ;;  %743 = vst.msk [vmem:[#allocation3 + $0x70] sm:$0xff] %vm728_vm4, %v709_v28  ;;  %1990 = vmatprep.mubr.msk.f32.mxu0 %vm1356_vm11, %v1340_v30 }
 0x1a1   : > { %744 = vst.msk [vmem:[#allocation3 + $0x78] sm:$0xff] %vm728_vm4, %v711_v29 }
 0x1a3   : > { %v806_v31 = vpop.permute.xlu0 %805  ;;  %v1341_v33 = vld [vmem:[#allocation3 + $0x68] sm:$0xff] }
 0x1a4   : > { %v808_v32 = vpop.permute.xlu1 %807  ;;  %840 = vst.msk [vmem:[#allocation3 + $0x70] sm:$0xff] %vm825_vm5, %v806_v31  ;;  %1991 = vmatmul.mubr.msk.f32.gmra.mrb[12].mxu0 %vm1356_vm11, %v1341_v33 }
 0x1a5   : > { %841 = vst.msk [vmem:[#allocation3 + $0x78] sm:$0xff] %vm825_vm5, %v808_v32 }
 0x1a7   : > { %v903_v35 = vpop.permute.xlu0 %902 }
 0x1a8   : > { %v905_v36 = vpop.permute.xlu1 %904  ;;  %937 = vst.msk [vmem:[#allocation3 + $0x70] sm:$0xff] %vm922_vm6, %v903_v35 }
 0x1a9   : > { %938 = vst.msk [vmem:[#allocation3 + $0x78] sm:$0xff] %vm922_vm6, %v905_v36 }
 0x1ab   : > { %v1000_v37 = vpop.permute.xlu0 %999 }
 0x1ac   : > { %v1002_v38 = vpop.permute.xlu1 %1001  ;;  %1034 = vst.msk [vmem:[#allocation3 + $0x70] sm:$0xff] %vm1019_vm7, %v1000_v37 }
 0x1ad   : > { %1035 = vst.msk [vmem:[#allocation3 + $0x78] sm:$0xff] %vm1019_vm7, %v1002_v38 }
 0x1af   : > { %v1098_v39 = vpop.permute.xlu0 %1097 }
 0x1b0   : > { %v1100_v40 = vpop.permute.xlu1 %1099  ;;  %1132 = vst.msk [vmem:[#allocation3 + $0x70] sm:$0xff] %vm1117_vm8, %v1098_v39 }
 0x1b1   : > { %1133 = vst.msk [vmem:[#allocation3 + $0x78] sm:$0xff] %vm1117_vm8, %v1100_v40 }
 0x1b3   : > { %v1195_v41 = vpop.permute.xlu0 %1194 }
 0x1b4   : > { %v1197_v42 = vpop.permute.xlu1 %1196  ;;  %1229 = vst.msk [vmem:[#allocation3 + $0x70] sm:$0xff] %vm1214_vm9, %v1195_v41 }
 0x1b5   : > { %1230 = vst.msk [vmem:[#allocation3 + $0x78] sm:$0xff] %vm1214_vm9, %v1197_v42 }
 0x1b7   : > { %v1292_v44 = vpop.permute.xlu0 %1291  ;;  %v1974_v45 = vpop.f32.mrb[0].mxu0 }
 0x1b8   : > { %1326 = vst.msk [vmem:[#allocation3 + $0x70] sm:$0xff] %vm1311_vm10, %v1292_v44  ;;  %v1481_v46 = vadd.f32 %v1974_v45, %v2929_v43  ;;  %v1294_v47 = vpop.permute.xlu1 %1293  ;;  %v1475_v48 = vpop.f32.mrb[1].mxu0  ;;  %v1570_v45 = vld [vmem:[%s3057_s5] sm:$0xff] }
 0x1b9   : > { %1327 = vst.msk [vmem:[#allocation3 + $0x78] sm:$0xff] %vm1311_vm10, %v1294_v47  ;;  %v1476_v49 = vadd.f32 %v2929_v43, %v1475_v48 }
 0x1ba   : > { %v1555_v50 = vmax.f32 %v1481_v46, 0.0 }
 0x1bb   : > { %v1554_v51 = vmax.f32 %v1476_v49, 0.0 }
 0x1bd   : > { %v2040_v53 = vpack.c.bf16 %v1555_v50, %v1554_v51 }
 0x1bf   : > { %2042 = vmatpush3.bf16.xpose.msk.msra.mxu1 %vm2937_vm13, %v2040_v53  ;;  %v1342_v54 = vld [vmem:[#allocation3 + $0x70] sm:$0xff] }
 0x1c0   : > { %1993 = vmatprep.mubr.msk.f32.mxu0 %vm1356_vm11, %v1342_v54  ;;  %v1343_v55 = vld [vmem:[#allocation3 + $0x78] sm:$0xff]  ;;  %2043 = vmatprep.subr.bf16.mxu1 %v2264_v34 }
 0x1c1   : > { %1994 = vmatmul.mubr.msk.f32.gmra.mrb[14].mxu0 %vm1356_vm11, %v1343_v55 }
 0x1d7   : > { %v1977_v58 = vpop.f32.mrb[2].mxu0 }
 0x1d8   : > { %v1491_v59 = vadd.f32 %v1977_v58, %v2929_v43  ;;  %v1485_v60 = vpop.f32.mrb[3].mxu0 }
 0x1d9   : > { %v1486_v61 = vadd.f32 %v2929_v43, %v1485_v60 }
 0x1da   : > { %v1557_v62 = vmax.f32 %v1491_v59, 0.0 }
 0x1db   : > { %v1556_v63 = vmax.f32 %v1486_v61, 0.0 }
 0x1dd   : > { %v2044_v1 = vpack.c.bf16 %v1557_v62, %v1556_v63 }
 0x1df   : > { %2046 = vmatpush3.bf16.xpose.msk.msra.mxu1 %vm2937_vm13, %v2044_v1 }
 0x1e0   : > { %2047 = vmatprep.subr.bf16.mxu1 %v2264_v34 }
 0x1f7   : > { %v1980_v2 = vpop.f32.mrb[4].mxu0 }
 0x1f8   : > { %v1501_v3 = vadd.f32 %v1980_v2, %v2929_v43  ;;  %v1495_v4 = vpop.f32.mrb[5].mxu0 }
 0x1f9   : > { %v1496_v5 = vadd.f32 %v2929_v43, %v1495_v4 }
 0x1fa   : > { %v1559_v56 = vmax.f32 %v1501_v3, 0.0 }
 0x1fb   : > { %v1558_v57 = vmax.f32 %v1496_v5, 0.0 }
 0x1fd   : > { %v2048_v6 = vpack.c.bf16 %v1559_v56, %v1558_v57 }
 0x1ff   : > { %2050 = vmatpush3.bf16.xpose.msk.msra.mxu1 %vm2937_vm13, %v2048_v6 }
 0x200   : > { %2051 = vmatprep.subr.bf16.mxu1 %v2264_v34 }
 0x217   : > { %v1983_v7 = vpop.f32.mrb[6].mxu0 }
 0x218   : > { %v1511_v8 = vadd.f32 %v1983_v7, %v2929_v43  ;;  %v1505_v9 = vpop.f32.mrb[7].mxu0 }
 0x219   : > { %v1506_v10 = vadd.f32 %v2929_v43, %v1505_v9 }
 0x21a   : > { %v1561_v11 = vmax.f32 %v1511_v8, 0.0 }
 0x21b   : > { %v1560_v12 = vmax.f32 %v1506_v10, 0.0 }
 0x21d   : > { %v2052_v13 = vpack.c.bf16 %v1561_v11, %v1560_v12 }
 0x21f   : > { %2054 = vmatpush3.bf16.xpose.msk.msra.mxu1 %vm2937_vm13, %v2052_v13 }
 0x220   : > { %2055 = vmatprep.subr.bf16.mxu1 %v2264_v34 }
 0x237   : > { %v1986_v16 = vpop.f32.mrb[8].mxu0 }
 0x238   : > { %v1521_v17 = vadd.f32 %v1986_v16, %v2929_v43  ;;  %v1515_v18 = vpop.f32.mrb[9].mxu0 }
 0x239   : > { %v1516_v19 = vadd.f32 %v2929_v43, %v1515_v18 }
 0x23a   : > { %v1563_v20 = vmax.f32 %v1521_v17, 0.0 }
 0x23b   : > { %v1562_v0 = vmax.f32 %v1516_v19, 0.0 }
 0x23d   : > { %v2056_v21 = vpack.c.bf16 %v1563_v20, %v1562_v0 }
 0x23f   : > { %2058 = vmatpush3.bf16.xpose.msk.msra.mxu1 %vm2937_vm13, %v2056_v21 }
 0x240   : > { %2059 = vmatprep.subr.bf16.mxu1 %v2264_v34 }
 0x257   : > { %v1989_v22 = vpop.f32.mrb[10].mxu0 }
 0x258   : > { %v1531_v23 = vadd.f32 %v1989_v22, %v2929_v43  ;;  %v1525_v24 = vpop.f32.mrb[11].mxu0 }
 0x259   : > { %v1526_v25 = vadd.f32 %v2929_v43, %v1525_v24 }
 0x25a   : > { %v1565_v26 = vmax.f32 %v1531_v23, 0.0 }
 0x25b   : > { %v1564_v27 = vmax.f32 %v1526_v25, 0.0 }
 0x25d   : > { %v2060_v28 = vpack.c.bf16 %v1565_v26, %v1564_v27 }
 0x25f   : > { %2062 = vmatpush3.bf16.xpose.msk.msra.mxu1 %vm2937_vm13, %v2060_v28 }
 0x260   : > { %2063 = vmatprep.subr.bf16.mxu1 %v2264_v34 }
 0x277   : > { %v1992_v29 = vpop.f32.mrb[12].mxu0 }
 0x278   : > { %v1541_v30 = vadd.f32 %v1992_v29, %v2929_v43  ;;  %v1535_v31 = vpop.f32.mrb[13].mxu0 }
 0x279   : > { %v1536_v32 = vadd.f32 %v2929_v43, %v1535_v31 }
 0x27a   : > { %v1567_v33 = vmax.f32 %v1541_v30, 0.0 }
 0x27b   : > { %v1566_v35 = vmax.f32 %v1536_v32, 0.0 }
 0x27d   : > { %v2064_v36 = vpack.c.bf16 %v1567_v33, %v1566_v35 }
 0x27f   : > { %2066 = vmatpush3.bf16.xpose.msk.msra.mxu1 %vm2937_vm13, %v2064_v36 }
 0x280   : > { %2067 = vmatprep.subr.bf16.mxu1 %v2264_v34  ;;  %v1575_v34 = vpop.permute.xlu0 %1574 }
 0x294   : > { %v1995_v37 = vpop.f32.mrb[14].mxu0 }
 0x295   : > { %v1551_v38 = vadd.f32 %v1995_v37, %v2929_v43  ;;  %v1545_v39 = vpop.f32.mrb[15].mxu0 }
 0x296   : > { %v1546_v40 = vadd.f32 %v2929_v43, %v1545_v39 }
 0x297   : > { %v1569_v41 = vmax.f32 %v1551_v38, 0.0 }
 0x298   : > { %v1568_v42 = vmax.f32 %v1546_v40, 0.0 }
 0x29a   : > { %v2068_v44 = vpack.c.bf16 %v1569_v41, %v1568_v42 }
 0x29c   : > { %2070 = vmatpush3.bf16.xpose.msk.msra.mxu1 %vm2937_vm13, %v2068_v44 }
 0x2a3   : > { %2029 = vmatmul.mubr.msk.f32.vlgmr.msra.gmra.mrb[0].mxu1 %vm1577_vm12, %v1570_v45 }
 0x376   : > { %v1695_v43 = vpop.f32.mrb[0].mxu1 }
 0x377   : > { %v1696_v46 = vadd.f32 %v1695_v43, %v1575_v34  ;;  %v2030_v47 = vpop.f32.mrb[1].mxu1 }
 0x379   : > { %1699 = vst [vmem:[%s388_s11] sm:$0xff] %v1696_v46 }
 0x37a   : > { %2170 = shalt.err (!%p2167_p1)
}
 0x37b   : > { %s2171_s22 = scalar_lea.hbm %s2995_s18, 128  ;;  %s2175_s23 = scalar_lea.hbm %s3059_s7, 512 }
 0x37c   : > { %p2172_p2 = scmp.ne.s32.totalorder %s2995_s18, %s2171_s22  ;;  %p2176_p6 = scmp.lt.u32.totalorder %s2995_s18, %s3059_s7 }
 0x37d   : > { %p2177_p7 = scmp.lt.u32.totalorder %s2175_s23, %s2171_s22  ;;  %p2179_p10 = scmp.lt.u32.totalorder %s2171_s22, %s2995_s18 }
 0x37e   : > { %p2173_p4 = pnand %p2172_p2, %p2359_p3 }
 0x37f   : > { %p2178_p9 = por %p2177_p7, %p2176_p6 }
 0x380   : > { %p2174_p5 = pneg %p2173_p4 }
 0x381   : > { %p2180_p11 = por %p2179_p10, %p2178_p9 }
 0x383   : > { %p2181_p12 = pnand %p2180_p11, %p2174_p5 }
 0x385   : > { %2184 = shalt.err (!%p2181_p12)
}
 0x386   : > { %2071 = dma.vmem_to_hbm [thread:$0]  (%p2359_p3), %s2997_s21, 128, %s2995_s18, %s1701_s28  }
 0x387 PF: > { %p2077_p13 = scmp.ge.s32.totalorder %s2251_s8, 2  ;;  %s1728_s12 = sand.u32 1, %s2223_s24  }
 0x388   : > { %s1729_s13 = scalar_lea.sflag [#allocation5], %s1728_s12 }
 0x389   : > { %p2074_p0 = pnand %p2077_p13, %p2368_p8 }
 0x38b   : > { %2218 = dma.done.wait (!%p2074_p0), %s1729_s13, 128  }
 0x38c   : > { %2220 = vsyncadd (!%p2074_p0), %s1729_s13, 4294967168  ;;  %s20_s8 = sadd.s32 1, %s2251_s8   ;;  %s3077_s27 = sld [smem:[#allocation7_spill]] }
 0x38d   : > { %p17_p1 = scmp.ge.s32.totalorder %s20_s8, 6   ;;  %s3078_s28 = sld [smem:[#allocation8_spill]] }
 0x38e   : > { %s3079_s29 = sld [smem:[#allocation9_spill]]  ;;  %s3080_s30 = sld [smem:[#allocation10_spill]] }
 0x38f   : > { %s3081_s24 = smov %s2227_s25  ;;  %s3082_s25 = smov %s2231_s26 }
 0x390   : > { %s3083_s26 = smov %s2377_s19  ;;  %19 = sbr.rel (!%p17_p1) target bundleno = 7 (0x7), region = 109 }
 0x397   :  { %1734 = vsyncpa [#allocation5], 1 }
 0x398   :  { %1736 = vsyncpa [#allocation5 + $0x1], 1 }

</bundles_post_ra>
